<compile_context>
chip_gen: v6e
topology: v6e:2x2x1
jax: 0.10.0
libtpu: 0.0.40
codegen_flags: <defaults>
</compile_context>

<pallas_src>
import functools

import jax
import jax.numpy as jnp
from jax.experimental import pallas as pl
from jax.experimental.pallas import tpu as pltpu


def _convlstm_kernel(xfold_ref, cprev_ref, w_ref, b_ref, hc_ref,
                     *, Bblk, H, W, K, KCin, Hd):
    """One batch-block per grid step.

    xfold_ref : (Bblk, H+K-1, W, K*Cin)  reflect-padded [x ; h_prev], kx folded
                                         into channels (index = kx*Cin + c)
    cprev_ref : (Bblk, H*W, Hd)          previous cell state (f32)
    w_ref     : (K, K*Cin, 4*Hd)         per-ky matmul weights
    b_ref     : (1, 4*Hd)                bias (f32)
    hc_ref    : (Bblk, H*W, 2*Hd)        packed output [h | c] (f32)
    """
    M = Bblk * H * W

    def tap(ky):
        # Slice on a non-tiled dim (3rd-from-last): no sublane relayout.  The
        # (Bblk, H, W, KCin) -> (M, KCin) collapse is a free layout change when
        # W is a multiple of 8 (sublane-aligned); otherwise Mosaic inserts
        # relayout copies (correct, just slower).
        patch = xfold_ref[:, ky:ky + H, :, :]
        patch = patch.reshape(M, KCin)
        return jnp.dot(patch, w_ref[ky], preferred_element_type=jnp.float32)

    acc = tap(0)
    for ky in range(1, K):
        acc = acc + tap(ky)
    acc = acc + b_ref[...].astype(jnp.float32)            # (1, 4*Hd) broadcast

    # PyTorch gate order along channels: i, f, o (sigmoid) then g (tanh).
    # Single full-width tanh pass on the EUP:
    #   sigmoid(x) = 0.5 * tanh(0.5 * x) + 0.5    for i/f/o lanes (< 3*Hd)
    #   tanh(x)                                   for g lanes
    # gate_mul / gate_add are (1, 4*Hd) and broadcast over M (no full iota).
    lane = jax.lax.broadcasted_iota(jnp.int32, (1, 4 * Hd), 1)
    is_sig = lane < 3 * Hd
    gate_mul = jnp.where(is_sig, 0.5, 1.0)
    gate_add = jnp.where(is_sig, 0.5, 0.0)
    act = jnp.tanh(acc * gate_mul) * gate_mul + gate_add

    i = act[:, 0 * Hd:1 * Hd]
    f = act[:, 1 * Hd:2 * Hd]
    o = act[:, 2 * Hd:3 * Hd]
    g = act[:, 3 * Hd:4 * Hd]

    c_prev = cprev_ref[...].reshape(M, Hd).astype(jnp.float32)
    c_cur = f * c_prev + i * g
    h_cur = o * jnp.tanh(c_cur)

    # Pack h and c side by side: one 64-lane store per row group instead of
    # two 32-lane masked stores, and half the output VMEM lane padding.
    hc = jnp.concatenate([h_cur, c_cur], axis=-1)          # (M, 2*Hd)
    hc_ref[...] = hc.reshape(Bblk, H * W, 2 * Hd).astype(hc_ref.dtype)


def _vmem_capacity_bytes():
    """Per-TensorCore VMEM capacity, with a conservative (v7x) fallback."""
    try:
        info = pltpu.get_tpu_info()
        cap = getattr(info, "vmem_capacity_bytes", None)
        if cap:
            return int(cap)
    except Exception:
        pass
    return 64 * 1024 * 1024


def _padded_vmem_bytes(shape, dtype):
    """Approximate VMEM tile footprint: last dim padded to 128 lanes,
    second-to-last to 8 sublanes."""
    itemsize = jnp.dtype(dtype).itemsize
    if not shape:
        return itemsize
    dims = list(shape)
    dims[-1] = -(-dims[-1] // 128) * 128
    if len(dims) >= 2:
        dims[-2] = -(-dims[-2] // 8) * 8
    n = 1
    for d in dims:
        n *= int(d)
    return n * itemsize


def _pick_batch_block(B, H, W, Hp, K, KCin, Hd, mm_dtype, vmem_budget,
                      max_block=8):
    """Largest divisor of B that (a) keeps the grid length >= 2 when B >= 2
    (pipelining, and megacore sharding on multi-TC chips) and (b) fits the
    double-buffered blocks + weights + in-kernel f32 intermediates inside the
    VMEM budget (64 MiB physical on v7x, 128 MiB on v5e/v6e)."""
    HW = H * W
    max_bb = min(B, max_block)
    if B >= 2:
        max_bb = min(max_bb, B // 2)          # guarantee grid >= 2
    best = 1
    for bb in range(1, max_bb + 1):
        if B % bb:
            continue
        M = bb * HW
        need = 0
        need += 2 * _padded_vmem_bytes((bb, Hp, W, KCin), mm_dtype)      # xfold (dbuf)
        need += 2 * _padded_vmem_bytes((bb, HW, Hd), jnp.float32)        # c_prev (dbuf)
        need += 2 * _padded_vmem_bytes((bb, HW, 2 * Hd), jnp.float32)    # packed out (dbuf)
        need += 2 * _padded_vmem_bytes((K, KCin, 4 * Hd), mm_dtype)      # weights
        need += _padded_vmem_bytes((1, 4 * Hd), jnp.float32)             # bias
        need += 8 * _padded_vmem_bytes((M, 4 * Hd), jnp.float32)         # f32 intermediates
        if need <= vmem_budget:
            best = bb
    return best


def conv_lstm_cell_forward_nhwc(x_nhwc, h_prev_nhwc, c_prev_nhwc, weight_oihw,
                                bias, kernel_size, *,
                                matmul_dtype=jnp.bfloat16, batch_block=None):
    """Channels-last ConvLSTMCell forward (preferred for recurrent rollouts:
    keep h/c in NHWC across timesteps and skip per-step NCHW transposes).

    x_nhwc      : (B, H, W, Cin_x)
    h_prev_nhwc : (B, H, W, Hd)
    c_prev_nhwc : (B, H, W, Hd)
    weight_oihw : (4*Hd, Cin_x+Hd, K, K)   (PyTorch Conv2d layout)
    bias        : (4*Hd,)
    matmul_dtype: conv-matmul operand dtype (bf16 by default; the MXU is
                  bf16-native on v5e/v6e/v7x).  Accumulation, gate math and
                  the cell state stay f32.  NOTE: with bf16 operands the
                  recurrent hidden state is rounded to bf16 before each conv,
                  so very long rollouts drift slightly from a pure-f32 run.
    returns (h, c): h (B,H,W,Hd) in x.dtype, c (B,H,W,Hd) in f32.
    """
    B, H, W, Cx = x_nhwc.shape
    Hd = h_prev_nhwc.shape[-1]
    K = int(kernel_size)
    Cin = Cx + Hd
    pad = K // 2
    if K % 2 != 1 or pad >= min(H, W):
        raise ValueError("reflect 'same' padding requires odd kernel_size with "
                         "kernel_size // 2 < min(H, W)")

    mm_dtype = (jnp.dtype(x_nhwc.dtype) if matmul_dtype is None
                else jnp.dtype(matmul_dtype))

    HW = H * W
    KCin = K * Cin
    Hp = H + 2 * pad

    vmem_cap = _vmem_capacity_bytes()
    # ~60% of physical VMEM: ~38 MiB on v7x (64 MiB), ~77 MiB on v5e/v6e (128 MiB).
    vmem_limit = int(min(max(32 * 2**20, vmem_cap * 6 // 10), 96 * 2**20))

    if batch_block is None:
        batch_block = _pick_batch_block(B, H, W, Hp, K, KCin, Hd, mm_dtype,
                                        vmem_limit)
    if B % batch_block != 0:
        raise ValueError("batch_block must divide the batch size")

    # --- JAX glue: pad, kx-fold, weight reshape (all emitted in mm_dtype) ---
    combined = jnp.concatenate([x_nhwc, h_prev_nhwc], axis=-1).astype(mm_dtype)
    combined_pad = jnp.pad(combined, ((0, 0), (pad, pad), (pad, pad), (0, 0)),
                           mode="reflect")                      # (B,Hp,Wp,Cin)
    # Fold the kx taps into channels: channel index = kx*Cin + c.
    xfold = jnp.concatenate(
        [combined_pad[:, :, kx:kx + W, :] for kx in range(K)],
        axis=-1)                                                # (B,Hp,W,K*Cin)

    # weight (O, I, ky, kx) -> (ky, kx, I, O) -> (K, K*Cin, 4*Hd); same
    # kx-major/channel-minor folding as the input.
    w_fold = jnp.transpose(weight_oihw, (2, 3, 1, 0)).reshape(K, KCin, 4 * Hd)
    w_fold = w_fold.astype(mm_dtype)
    b2d = bias.reshape(1, 4 * Hd).astype(jnp.float32)
    c_prev = c_prev_nhwc.reshape(B, HW, Hd).astype(jnp.float32)

    kernel = functools.partial(_convlstm_kernel, Bblk=batch_block, H=H, W=W,
                               K=K, KCin=KCin, Hd=Hd)

    mm_item = jnp.dtype(mm_dtype).itemsize
    cost = pl.CostEstimate(
        flops=2 * B * HW * K * K * Cin * 4 * Hd,
        transcendentals=5 * B * HW * Hd,        # one 4*Hd-wide tanh + tanh(c)
        bytes_accessed=(B * Hp * W * KCin * mm_item          # xfold
                        + B * HW * Hd * 4                    # c_prev
                        + K * KCin * 4 * Hd * mm_item        # weights
                        + 4 * Hd * 4                         # bias
                        + B * HW * 2 * Hd * 4),              # packed [h|c] out
    )

    hc = pl.pallas_call(
        kernel,
        out_shape=jax.ShapeDtypeStruct((B, HW, 2 * Hd), jnp.float32),
        grid_spec=pltpu.PrefetchScalarGridSpec(
            num_scalar_prefetch=0,
            grid=(B // batch_block,),
            in_specs=[
                pl.BlockSpec((batch_block, Hp, W, KCin), lambda b: (b, 0, 0, 0)),
                pl.BlockSpec((batch_block, HW, Hd), lambda b: (b, 0, 0)),
                pl.BlockSpec((K, KCin, 4 * Hd), lambda b: (0, 0, 0)),
                pl.BlockSpec((1, 4 * Hd), lambda b: (0, 0)),
            ],
            out_specs=pl.BlockSpec((batch_block, HW, 2 * Hd),
                                   lambda b: (b, 0, 0)),
        ),
        compiler_params=pltpu.CompilerParams(
            dimension_semantics=("parallel",),
            vmem_limit_bytes=vmem_limit),
        cost_estimate=cost,
    )(xfold, c_prev, w_fold, b2d)

    hc = hc.reshape(B, H, W, 2 * Hd)
    h = hc[..., :Hd].astype(x_nhwc.dtype)
    c = hc[..., Hd:]                               # cell state stays f32
    return h, c


def conv_lstm_cell_forward(x_nchw, h_prev_nchw, c_prev_nchw, weight_oihw, bias,
                           kernel_size, *, matmul_dtype=jnp.bfloat16,
                           batch_block=None):
    """NCHW wrapper matching the PyTorch module's forward signature.

    For time-stepped rollouts prefer conv_lstm_cell_forward_nhwc and keep the
    state channels-last across steps (saves two full-array HBM transposes per
    timestep).  Returns (h_cur, c_cur) in NCHW: h in x.dtype, c in f32.
    """
    x_nhwc = jnp.transpose(x_nchw, (0, 2, 3, 1))
    h_nhwc = jnp.transpose(h_prev_nchw, (0, 2, 3, 1))
    c_nhwc = jnp.transpose(c_prev_nchw, (0, 2, 3, 1))
    h, c = conv_lstm_cell_forward_nhwc(x_nhwc, h_nhwc, c_nhwc, weight_oihw,
                                       bias, kernel_size,
                                       matmul_dtype=matmul_dtype,
                                       batch_block=batch_block)
    return jnp.transpose(h, (0, 3, 1, 2)), jnp.transpose(c, (0, 3, 1, 2))


def _reference_forward(x, h_prev, c_prev, weight, bias, kernel_size):
    """Plain-JAX reference matching the PyTorch module semantics (NCHW, f32)."""
    pad = kernel_size // 2
    combined = jnp.concatenate([x, h_prev], axis=1)                 # (B,Cin,H,W)
    combined_pad = jnp.pad(combined, ((0, 0), (0, 0), (pad, pad), (pad, pad)),
                           mode="reflect")
    conv = jax.lax.conv_general_dilated(
        combined_pad, weight, window_strides=(1, 1), padding="VALID",
        dimension_numbers=("NCHW", "OIHW", "NCHW"))
    conv = conv + bias[None, :, None, None]
    Hd = h_prev.shape[1]
    cc_i, cc_f, cc_o, cc_g = jnp.split(conv, [Hd, 2 * Hd, 3 * Hd], axis=1)
    i = jax.nn.sigmoid(cc_i)
    f = jax.nn.sigmoid(cc_f)
    g = jnp.tanh(cc_g)
    c_cur = f * c_prev + i * g
    o = jax.nn.sigmoid(cc_o)
    h_cur = o * jnp.tanh(c_cur)
    return h_cur, c_cur


if __name__ == "__main__":
    # Small shapes consistent with the module (batchnorm flag is unused in the
    # module's forward, so there is nothing to translate for it).
    B, input_dim, hidden_dim, H, W, K = 2, 4, 32, 16, 16, 3
    Cin = input_dim + hidden_dim

    key = jax.random.PRNGKey(0)
    kx, kh, kc, kw, kb = jax.random.split(key, 5)

    x = jax.random.normal(kx, (B, input_dim, H, W), dtype=jnp.float32)
    h_prev = jax.random.normal(kh, (B, hidden_dim, H, W), dtype=jnp.float32)
    c_prev = jax.random.normal(kc, (B, hidden_dim, H, W), dtype=jnp.float32)

    # xavier_uniform init with gain = calculate_gain('tanh') = 5/3 (as in the
    # module); small random bias to exercise the bias path.
    fan_in = Cin * K * K
    fan_out = 4 * hidden_dim * K * K
    gain = 5.0 / 3.0
    bound = gain * (6.0 / (fan_in + fan_out)) ** 0.5
    weight = jax.random.uniform(kw, (4 * hidden_dim, Cin, K, K),
                                minval=-bound, maxval=bound, dtype=jnp.float32)
    bias = 0.1 * jax.random.normal(kb, (4 * hidden_dim,), dtype=jnp.float32)

    h_ref, c_ref = _reference_forward(x, h_prev, c_prev, weight, bias, K)

    # Explicit f32 matmul path (exact PyTorch semantics).
    h_f32, c_f32 = conv_lstm_cell_forward(x, h_prev, c_prev, weight, bias, K,
                                          matmul_dtype=jnp.float32)
    jax.block_until_ready((h_f32, c_f32))
    assert h_f32.shape == (B, hidden_dim, H, W)
    assert c_f32.shape == (B, hidden_dim, H, W)
    assert jnp.allclose(h_f32, h_ref, rtol=1e-4, atol=1e-4)
    assert jnp.allclose(c_f32, c_ref, rtol=1e-4, atol=1e-4)

    # Default path: bf16 matmul operands on every generation (MXU-native);
    # accumulation, gates and the cell state stay f32, so only conv-operand
    # rounding differs from the reference.
    h_bf, c_bf = conv_lstm_cell_forward(x, h_prev, c_prev, weight, bias, K)
    jax.block_until_ready((h_bf, c_bf))
    assert jnp.allclose(h_bf, h_ref, rtol=5e-2, atol=5e-2)
    assert jnp.allclose(c_bf, c_ref, rtol=5e-2, atol=5e-2)

    print("KERNEL_OK")
</pallas_src>

<mosaic_0001>
module attributes {stable_mosaic.version = 11 : i64} {
  func.func @_convlstm_kernel(%arg0: i32, %arg1: memref<1x18x16x108xf32, #tpu.memory_space<vmem>>, %arg2: memref<1x256x32xf32, #tpu.memory_space<vmem>>, %arg3: memref<3x108x128xf32, #tpu.memory_space<vmem>>, %arg4: memref<1x128xf32, #tpu.memory_space<vmem>>, %arg5: memref<1x256x64xf32, #tpu.memory_space<vmem>>) attributes {dimension_semantics = [#tpu.dimension_semantics<parallel>], iteration_bounds = array<i64: 2>, scalar_prefetch = 0 : i64, scratch_operands = 0 : i64, tpu.core_type = #tpu.core_type<tc>, window_params = [{transform_indices = @transform_0, window_bounds = array<i64: 1, 18, 16, 108>}, {transform_indices = @transform_1, window_bounds = array<i64: 1, 256, 32>}, {pipeline_mode = #tpu.pipeline_mode<synchronous>, transform_indices = @transform_2, window_bounds = array<i64: 3, 108, 128>}, {pipeline_mode = #tpu.pipeline_mode<synchronous>, transform_indices = @transform_3, window_bounds = array<i64: 1, 128>}, {transform_indices = @transform_4, window_bounds = array<i64: 1, 256, 64>}]} {
    %c0 = arith.constant 0 : index
    %c0_0 = arith.constant 0 : index
    %c0_1 = arith.constant 0 : index
    %c0_2 = arith.constant 0 : index
    %0 = vector.load %arg1[%c0, %c0_0, %c0_1, %c0_2] : memref<1x18x16x108xf32, #tpu.memory_space<vmem>>, vector<1x16x16x108xf32>
    %1 = vector.shape_cast %0 : vector<1x16x16x108xf32> to vector<256x108xf32>
    %c0_3 = arith.constant 0 : index
    %c0_4 = arith.constant 0 : index
    %c0_5 = arith.constant 0 : index
    %2 = vector.load %arg3[%c0_3, %c0_4, %c0_5] : memref<3x108x128xf32, #tpu.memory_space<vmem>>, vector<1x108x128xf32>
    %3 = vector.shape_cast %2 : vector<1x108x128xf32> to vector<108x128xf32>
    %cst = arith.constant dense<0.000000e+00> : vector<256x128xf32>
    %4 = tpu.matmul %1, %3, %cst {dimension_numbers = #tpu.dot_dimension_numbers<[1], [0], [0], [1], [0, 0, 1, 1], [], []>} : vector<256x108xf32>, vector<108x128xf32>, vector<256x128xf32> -> vector<256x128xf32>
    %c0_6 = arith.constant 0 : index
    %c1 = arith.constant 1 : index
    %c0_7 = arith.constant 0 : index
    %c0_8 = arith.constant 0 : index
    %5 = vector.load %arg1[%c0_6, %c1, %c0_7, %c0_8] : memref<1x18x16x108xf32, #tpu.memory_space<vmem>>, vector<1x16x16x108xf32>
    %6 = vector.shape_cast %5 : vector<1x16x16x108xf32> to vector<256x108xf32>
    %c1_9 = arith.constant 1 : index
    %c0_10 = arith.constant 0 : index
    %c0_11 = arith.constant 0 : index
    %7 = vector.load %arg3[%c1_9, %c0_10, %c0_11] : memref<3x108x128xf32, #tpu.memory_space<vmem>>, vector<1x108x128xf32>
    %8 = vector.shape_cast %7 : vector<1x108x128xf32> to vector<108x128xf32>
    %cst_12 = arith.constant dense<0.000000e+00> : vector<256x128xf32>
    %9 = tpu.matmul %6, %8, %cst_12 {dimension_numbers = #tpu.dot_dimension_numbers<[1], [0], [0], [1], [0, 0, 1, 1], [], []>} : vector<256x108xf32>, vector<108x128xf32>, vector<256x128xf32> -> vector<256x128xf32>
    %10 = arith.addf %4, %9 : vector<256x128xf32>
    %c0_13 = arith.constant 0 : index
    %c2 = arith.constant 2 : index
    %c0_14 = arith.constant 0 : index
    %c0_15 = arith.constant 0 : index
    %11 = vector.load %arg1[%c0_13, %c2, %c0_14, %c0_15] : memref<1x18x16x108xf32, #tpu.memory_space<vmem>>, vector<1x16x16x108xf32>
    %12 = vector.shape_cast %11 : vector<1x16x16x108xf32> to vector<256x108xf32>
    %c2_16 = arith.constant 2 : index
    %c0_17 = arith.constant 0 : index
    %c0_18 = arith.constant 0 : index
    %13 = vector.load %arg3[%c2_16, %c0_17, %c0_18] : memref<3x108x128xf32, #tpu.memory_space<vmem>>, vector<1x108x128xf32>
    %14 = vector.shape_cast %13 : vector<1x108x128xf32> to vector<108x128xf32>
    %cst_19 = arith.constant dense<0.000000e+00> : vector<256x128xf32>
    %15 = tpu.matmul %12, %14, %cst_19 {dimension_numbers = #tpu.dot_dimension_numbers<[1], [0], [0], [1], [0, 0, 1, 1], [], []>} : vector<256x108xf32>, vector<108x128xf32>, vector<256x128xf32> -> vector<256x128xf32>
    %16 = arith.addf %10, %15 : vector<256x128xf32>
    %c0_20 = arith.constant 0 : index
    %c0_21 = arith.constant 0 : index
    %17 = vector.load %arg4[%c0_20, %c0_21] : memref<1x128xf32, #tpu.memory_space<vmem>>, vector<1x128xf32>
    %18 = vector.broadcast %17 : vector<1x128xf32> to vector<256x128xf32>
    %19 = arith.addf %16, %18 : vector<256x128xf32>
    %20 = tpu.iota {dimensions = array<i32: 1>} : vector<1x128xi32>
    %c96_i32 = arith.constant 96 : i32
    %21 = vector.broadcast %c96_i32 : i32 to vector<1x128xi32>
    %22 = arith.cmpi slt, %20, %21 : vector<1x128xi32>
    %cst_22 = arith.constant 5.000000e-01 : f32
    %cst_23 = arith.constant 1.000000e+00 : f32
    %23 = vector.broadcast %cst_22 : f32 to vector<1x128xf32>
    %24 = vector.broadcast %cst_23 : f32 to vector<1x128xf32>
    %25 = arith.select %22, %23, %24 : vector<1x128xi1>, vector<1x128xf32>
    %cst_24 = arith.constant 5.000000e-01 : f32
    %cst_25 = arith.constant 0.000000e+00 : f32
    %26 = vector.broadcast %cst_24 : f32 to vector<1x128xf32>
    %27 = vector.broadcast %cst_25 : f32 to vector<1x128xf32>
    %28 = arith.select %22, %26, %27 : vector<1x128xi1>, vector<1x128xf32>
    %29 = vector.broadcast %25 : vector<1x128xf32> to vector<256x128xf32>
    %30 = arith.mulf %19, %29 : vector<256x128xf32>
    %31 = math.tanh %30 : vector<256x128xf32>
    %32 = vector.broadcast %25 : vector<1x128xf32> to vector<256x128xf32>
    %33 = arith.mulf %31, %32 : vector<256x128xf32>
    %34 = vector.broadcast %28 : vector<1x128xf32> to vector<256x128xf32>
    %35 = arith.addf %33, %34 : vector<256x128xf32>
    %36 = vector.extract_strided_slice %35 {offsets = [0, 0], sizes = [256, 32], strides = [1, 1]} : vector<256x128xf32> to vector<256x32xf32>
    %37 = vector.extract_strided_slice %35 {offsets = [0, 32], sizes = [256, 32], strides = [1, 1]} : vector<256x128xf32> to vector<256x32xf32>
    %38 = vector.extract_strided_slice %35 {offsets = [0, 64], sizes = [256, 32], strides = [1, 1]} : vector<256x128xf32> to vector<256x32xf32>
    %39 = vector.extract_strided_slice %35 {offsets = [0, 96], sizes = [256, 32], strides = [1, 1]} : vector<256x128xf32> to vector<256x32xf32>
    %c0_26 = arith.constant 0 : index
    %c0_27 = arith.constant 0 : index
    %c0_28 = arith.constant 0 : index
    %40 = vector.load %arg2[%c0_26, %c0_27, %c0_28] : memref<1x256x32xf32, #tpu.memory_space<vmem>>, vector<1x256x32xf32>
    %41 = vector.shape_cast %40 : vector<1x256x32xf32> to vector<256x32xf32>
    %42 = arith.mulf %37, %41 : vector<256x32xf32>
    %43 = arith.mulf %36, %39 : vector<256x32xf32>
    %44 = arith.addf %42, %43 : vector<256x32xf32>
    %45 = math.tanh %44 : vector<256x32xf32>
    %46 = arith.mulf %38, %45 : vector<256x32xf32>
    %47 = tpu.concatenate %46, %44 in 1 : vector<256x32xf32>, vector<256x32xf32> -> vector<256x64xf32>
    %48 = vector.shape_cast %47 : vector<256x64xf32> to vector<1x256x64xf32>
    %c0_29 = arith.constant 0 : index
    %c0_30 = arith.constant 0 : index
    %c0_31 = arith.constant 0 : index
    %49 = vector.load %arg5[%c0_29, %c0_30, %c0_31] : memref<1x256x64xf32, #tpu.memory_space<vmem>>, vector<1x256x64xf32>
    tpu.vector_store %arg5[%c0_29, %c0_30, %c0_31], %48 {strides = array<i32>} : memref<1x256x64xf32, #tpu.memory_space<vmem>>, vector<1x256x64xf32>,
    return
  }
  func.func @transform_0(%arg0: i32) -> (i32, i32, i32, i32) {
    %c0_i32 = arith.constant 0 : i32
    %c0_i32_0 = arith.constant 0 : i32
    %c0_i32_1 = arith.constant 0 : i32
    %c0_i32_2 = arith.constant 0 : i32
    return %arg0, %c0_i32, %c0_i32_0, %c0_i32_1 : i32, i32, i32, i32
  }
  func.func @transform_1(%arg0: i32) -> (i32, i32, i32) {
    %c0_i32 = arith.constant 0 : i32
    %c0_i32_0 = arith.constant 0 : i32
    %c0_i32_1 = arith.constant 0 : i32
    return %arg0, %c0_i32, %c0_i32_0 : i32, i32, i32
  }
  func.func @transform_2(%arg0: i32) -> (i32, i32, i32) {
    %c0_i32 = arith.constant 0 : i32
    %c0_i32_0 = arith.constant 0 : i32
    %c0_i32_1 = arith.constant 0 : i32
    %c0_i32_2 = arith.constant 0 : i32
    return %c0_i32, %c0_i32_0, %c0_i32_1 : i32, i32, i32
  }
  func.func @transform_3(%arg0: i32) -> (i32, i32) {
    %c0_i32 = arith.constant 0 : i32
    %c0_i32_0 = arith.constant 0 : i32
    %c0_i32_1 = arith.constant 0 : i32
    return %c0_i32, %c0_i32_0 : i32, i32
  }
  func.func @transform_4(%arg0: i32) -> (i32, i32, i32) {
    %c0_i32 = arith.constant 0 : i32
    %c0_i32_0 = arith.constant 0 : i32
    %c0_i32_1 = arith.constant 0 : i32
    return %arg0, %c0_i32, %c0_i32_0 : i32, i32, i32
  }
}

</mosaic_0001>

<bundles_post_ra>
// kernel: tpu_custom_call.1
= control target key start
LH: loop header
LB: loop body
LE: loop exit
PB: predicated region body
PF: predicated region fallthrough
CT: control target
= control target key end

     0   :  { %9 = vsyncpa [#allocation3], 0  ;;  %s3328_s15 = smov 0   ;;  %s4603_s0 = inlined_call_operand.vmem [shape: f32[2,18,16,108], index: 0, kind: input, shape index: {}]   ;;  %s4604_s1 = inlined_call_operand.vmem [shape: f32[2,256,32], index: 1, kind: input, shape index: {}]   ;;  %s4605_s2 = inlined_call_operand.hbm [shape: f32[3,108,128], index: 2, kind: input, shape index: {}]   ;;  %s4606_s3 = inlined_call_operand.vmem [shape: f32[1,128], index: 3, kind: input, shape index: {}]   ;;  %s4607_s4 = inlined_call_operand.vmem [shape: f32[2,256,64], index: 4, kind: output, shape index: {}]  }
   0x1 LB: > { %s3334_s16 = sadd.s32 4294967295, %s3294_s15   ;;  %p2532_p0 = scmp.ge.s32.totalorder %s3294_s15, 1  ;;  %s3294_s15 = sphi %s3328_s15, %s15_s15  }
   0x2   : > { %p140_p1 = scmp.lt.s32.totalorder %s3294_s15, 3  ;;  %s3296_s17 = smov [#allocation2]  }
   0x3   : > { %s152_s18 = sshll.u32 %s3296_s17, 4  ;;  %p3113_p3 = scmp.eq.s32.totalorder %s3334_s16, 0  ;;  %s153_s18 = int_to_ptr.vmem [resolvable:$true] %s152_s18 }
   0x4   : > { %p3338_p2 = pnand %p2532_p0, %p140_p1  ;;  %s3269_s20 = scalar_lea.vmem %s153_s18, 5376 }
   0x5   : > { %p3270_p7 = scmp.ne.s32.totalorder %s153_s18, %s3269_s20  ;;  %p3277_p10 = scmp.lt.s32.totalorder %s153_s18, %s153_s18 }
   0x6   : > { %p3109_p4 = pneg %p3338_p2  ;;  %p3278_p11 = scmp.lt.s32.totalorder %s3269_s20, %s3269_s20 }
   0x8   : > { %p3110_p5 = pnand %p3113_p3, %p3109_p4  ;;  %p3279_p12 = por %p3278_p11, %p3277_p10 }
   0xa   : > { %p3260_p6 = pneg %p3110_p5 }
   0xc   : > { %p3272_p8 = pnand %p3270_p7, %p3260_p6 }
   0xe   : > { %p3273_p9 = pneg %p3272_p8 }
  0x10   : > { %p3280_p13 = pnand %p3279_p12, %p3273_p9 }
  0x12   : > { %3283 = shalt.err (!%p3280_p13)
}
  0x13   : > { %s3297_s21 = smov 128   ;;  %s3298_s22 = smov 8  }
  0x14   : > { %3112 = dma.hbm_to_vmem [thread:$0]  (!%p3110_p5), %s4605_s2, 5376, %s153_s18, [#allocation3], %s3297_s21, %s3297_s21, %s3298_s22  }
  0x15   : > { %187 = sbr.rel (%p3338_p2) target bundleno = 865 (0x361), region = 36 }
  0x1a   : > { %3289 = dma.done.wait (%p3113_p3), [#allocation3], 5376  }
  0x1b   : > { %3291 = vsyncadd (%p3113_p3), [#allocation3], 4294961920  ;;  %vm424_vm0 = vcmask 1043456   ;;  %v326_v0 = vld [vmem:[#allocation2 + $0xd8] sm:$0xf]  ;;  %v325_v1 = vld [vmem:[#allocation2 + $0xd0] sm:$0xff] }
  0x1c   : > { %3076 = vmatprep.subr.msk.mxu1 %vm424_vm0, %v326_v0  ;;  %2848 = vmatprep.subr.msk.mxu0 %vm424_vm0, %v326_v0  ;;  %v324_v2 = vld [vmem:[#allocation2 + $0xc8] sm:$0xff]  ;;  %v323_v3 = vld [vmem:[#allocation2 + $0xc0] sm:$0xff]  ;;  %v322_v4 = vld [vmem:[#allocation2 + $0xb8] sm:$0xff]  ;;  %p218_p0 = scmp.lt.s32.totalorder %s3334_s16, 1  ;;  %vm327_vm1 = vcmask 883712   ;;  %s3299_s7 = smov 32  }
  0x1d   : > { %3090 = vmatpush3.msk.msra.mxu1 %vm424_vm0, %v326_v0  ;;  %2849 = vmatpush3.msk.msra.mxu0 %vm424_vm0, %v326_v0  ;;  %v321_v5 = vld [vmem:[#allocation2 + $0xb0] sm:$0xff]  ;;  %v320_v6 = vld [vmem:[#allocation2 + $0xa8] sm:$0xff]  ;;  %v319_v7 = vld [vmem:[#allocation2 + $0xa0] sm:$0xff]  ;;  %s3302_s10 = smov 64   ;;  %vm2385_vm3 = vcmask 261120   ;;  %vm2418_vm4 = vcmask 523264  }
  0x1e   : > { %3077 = vmatprep.subr.mxu1 %v325_v1  ;;  %2850 = vmatprep.subr.mxu0 %v325_v1  ;;  %v318_v8 = vld [vmem:[#allocation2 + $0x98] sm:$0xff]  ;;  %s4660_s16 = smov (!%p218_p0, %s3334_s16), 1  ;;  %v317_v9 = vld [vmem:[#allocation2 + $0x90] sm:$0xff]  ;;  %v316_v10 = vld [vmem:[#allocation2 + $0x88] sm:$0xff] }
  0x1f   : > { %3091 = vmatpush3.msra.mxu1 %v325_v1  ;;  %2851 = vmatpush3.msra.mxu0 %v325_v1  ;;  %s3104_s25 = smul.u32 288, %s4660_s16  ;;  %v315_v11 = vld [vmem:[#allocation2 + $0x80] sm:$0xff]  ;;  %v314_v12 = vld [vmem:[#allocation2 + $0x78] sm:$0xff]  ;;  %v313_v13 = vld [vmem:[#allocation2 + $0x70] sm:$0xff]  ;;  %s2708_s29 = sshll.u32 %s4660_s16, 8 }
  0x20   : > { %3078 = vmatprep.subr.mxu1 %v324_v2  ;;  %2852 = vmatprep.subr.mxu0 %v324_v2  ;;  %v278_v17 = vld [vmem:[#allocation2 + $0x68] sm:$0xf]  ;;  %v277_v21 = vld [vmem:[#allocation2 + $0x60] sm:$0xff]  ;;  %v276_v25 = vld [vmem:[#allocation2 + $0x58] sm:$0xff]  ;;  %s3541_s6 = scalar_lea.vmem %s4604_s1, %s2708_s29  ;;  %s4470_s13 = scalar_lea.vmem %s4607_s4, %s2708_s29 }
  0x21   : > { %3092 = vmatpush3.msra.mxu1 %v324_v2  ;;  %2853 = vmatpush3.msra.mxu0 %v324_v2  ;;  %s3368_s28 = scalar_lea.vmem %s4603_s0, %s3104_s25  ;;  %v1024_v19 = vld [vmem:[#allocation2 + $0x148] sm:$0xf]  ;;  %v1023_v26 = vld [vmem:[#allocation2 + $0x140] sm:$0xff]  ;;  %v275_v28 = vld [vmem:[#allocation2 + $0x50] sm:$0xff] }
  0x22   : > { %3079 = vmatprep.subr.mxu1 %v323_v3  ;;  %2854 = vmatprep.subr.mxu0 %v323_v3  ;;  %v3371_v14 = vld [vmem:[%s3368_s28 + $0x90] sm:$0xff]  ;;  %v3377_v16 = vld [vmem:[%s3368_s28 + $0x98] sm:$0xff]  ;;  %v3387_v20 = vld [vmem:[%s3368_s28 + $0xa0] sm:$0xff] }
  0x23   : > { %3093 = vmatpush3.msra.mxu1 %v323_v3  ;;  %2855 = vmatpush3.msra.mxu0 %v323_v3  ;;  %v3374_v15 = vld [vmem:[%s3368_s28 + $0x10] sm:$0xff]  ;;  %v3382_v18 = vld [vmem:[%s3368_s28 + $0x18] sm:$0xff]  ;;  %v3396_v22 = vld [vmem:[%s3368_s28 + $0x20] sm:$0xff] }
  0x24   : > { %3080 = vmatprep.subr.mxu1 %v322_v4  ;;  %2856 = vmatprep.subr.mxu0 %v322_v4  ;;  %v3399_v23 = vld [vmem:[%s3368_s28 + $0xa8] sm:$0xff]  ;;  %v3415_v27 = vld [vmem:[%s3368_s28 + $0xb0] sm:$0xff]  ;;  %v1022_v29 = vld [vmem:[#allocation2 + $0x138] sm:$0xff] }
  0x25   : > { %3094 = vmatpush3.msra.mxu1 %v322_v4  ;;  %2857 = vmatpush3.msra.mxu0 %v322_v4  ;;  %v3405_v24 = vld [vmem:[%s3368_s28 + $0x28] sm:$0xff]  ;;  %v3418_v30 = vld [vmem:[%s3368_s28 + $0x30] sm:$0xff]  ;;  %v3421_v31 = vld [vmem:[%s3368_s28 + $0xb8] sm:$0xff] }
  0x26   : > { %3081 = vmatprep.subr.mxu1 %v321_v5  ;;  %2858 = vmatprep.subr.mxu0 %v321_v5  ;;  %v3426_v32 = vld [vmem:[%s3368_s28 + $0x38] sm:$0xff]  ;;  %v1021_v33 = vld [vmem:[#allocation2 + $0x130] sm:$0xff]  ;;  %v274_v34 = vld [vmem:[#allocation2 + $0x48] sm:$0xff] }
  0x27   : > { %3095 = vmatpush3.msra.mxu1 %v321_v5  ;;  %2859 = vmatpush3.msra.mxu0 %v321_v5  ;;  %v3433_v35 = vld [vmem:[%s3368_s28 + $0xc0] sm:$0xff]  ;;  %v3441_v37 = vld [vmem:[%s3368_s28 + $0xc8] sm:$0xff]  ;;  %v272_v41 = vld [vmem:[#allocation2 + $0x38] sm:$0xff] }
  0x28   : > { %3082 = vmatprep.subr.mxu1 %v320_v6  ;;  %2860 = vmatprep.subr.mxu0 %v320_v6  ;;  %v3438_v36 = vld [vmem:[%s3368_s28 + $0x40] sm:$0xff]  ;;  %v1020_v39 = vld [vmem:[#allocation2 + $0x128] sm:$0xff]  ;;  %v3455_v43 = vld [vmem:[%s3368_s28 + $0xd0] sm:$0xff] }
  0x29   : > { %3096 = vmatpush3.msra.mxu1 %v320_v6  ;;  %2861 = vmatpush3.msra.mxu0 %v320_v6  ;;  %v273_v38 = vld [vmem:[#allocation2 + $0x40] sm:$0xff]  ;;  %v3446_v40 = vld [vmem:[%s3368_s28 + $0x48] sm:$0xff]  ;;  %v3458_v44 = vld [vmem:[%s3368_s28 + $0x50] sm:$0xff] }
  0x2a   : > { %3083 = vmatprep.subr.mxu1 %v319_v7  ;;  %2862 = vmatprep.subr.mxu0 %v319_v7  ;;  %v1019_v42 = vld [vmem:[#allocation2 + $0x120] sm:$0xff]  ;;  %v3461_v45 = vld [vmem:[%s3368_s28 + $0xd8] sm:$0xff]  ;;  %v271_v46 = vld [vmem:[#allocation2 + $0x30] sm:$0xff] }
  0x2b   : > { %3097 = vmatpush3.msra.mxu1 %v319_v7  ;;  %2863 = vmatpush3.msra.mxu0 %v319_v7  ;;  %v1018_v47 = vld [vmem:[#allocation2 + $0x118] sm:$0xff]  ;;  %v1017_v49 = vld [vmem:[#allocation2 + $0x110] sm:$0xff]  ;;  %v3473_v50 = vld [vmem:[%s3368_s28 + $0xe0] sm:$0xff] }
  0x2c   : > { %3084 = vmatprep.subr.mxu1 %v318_v8  ;;  %2864 = vmatprep.subr.mxu0 %v318_v8  ;;  %v3466_v48 = vld [vmem:[%s3368_s28 + $0x58] sm:$0xff]  ;;  %v270_v51 = vld [vmem:[#allocation2 + $0x28] sm:$0xff]  ;;  %v3478_v52 = vld [vmem:[%s3368_s28 + $0x60] sm:$0xff] }
  0x2d   : > { %3098 = vmatpush3.msra.mxu1 %v318_v8  ;;  %2865 = vmatpush3.msra.mxu0 %v318_v8  ;;  %v3481_v53 = vld [vmem:[%s3368_s28 + $0xe8] sm:$0xff]  ;;  %v269_v55 = vld [vmem:[#allocation2 + $0x20] sm:$0xff]  ;;  %v3495_v57 = vld [vmem:[%s3368_s28 + $0xf0] sm:$0xff] }
  0x2e   : > { %3085 = vmatprep.subr.mxu1 %v317_v9  ;;  %2866 = vmatprep.subr.mxu0 %v317_v9  ;;  %v3486_v54 = vld [vmem:[%s3368_s28 + $0x68] sm:$0xff]  ;;  %v268_v58 = vld [vmem:[#allocation2 + $0x18] sm:$0xff]  ;;  %v1015_v59 = vld [vmem:[#allocation2 + $0x100] sm:$0xff] }
  0x2f   : > { %3099 = vmatpush3.msra.mxu1 %v317_v9  ;;  %2867 = vmatpush3.msra.mxu0 %v317_v9  ;;  %v1016_v56 = vld [vmem:[#allocation2 + $0x108] sm:$0xff]  ;;  %v3498_v60 = vld [vmem:[%s3368_s28 + $0x70] sm:$0xff]  ;;  %v3501_v61 = vld [vmem:[%s3368_s28 + $0xf8] sm:$0xff] }
  0x30   : > { %3086 = vmatprep.subr.mxu1 %v316_v10  ;;  %2868 = vmatprep.subr.mxu0 %v316_v10  ;;  %v3506_v62 = vld [vmem:[%s3368_s28 + $0x78] sm:$0xff]  ;;  %v267_v0 = vld [vmem:[#allocation2 + $0x10] sm:$0xff]  ;;  %v3513_v1 = vld [vmem:[%s3368_s28 + $0x100] sm:$0xff] }
  0x31   : > { %3100 = vmatpush3.msra.mxu1 %v316_v10  ;;  %2869 = vmatpush3.msra.mxu0 %v316_v10  ;;  %v1014_v63 = vld [vmem:[#allocation2 + $0xf8] sm:$0xff]  ;;  %v1013_v2 = vld [vmem:[#allocation2 + $0xf0] sm:$0xff]  ;;  %v3518_v3 = vld [vmem:[%s3368_s28 + $0x80] sm:$0xff] }
  0x32   : > { %3087 = vmatprep.subr.mxu1 %v315_v11  ;;  %2870 = vmatprep.subr.mxu0 %v315_v11  ;;  %v3521_v4 = vld [vmem:[%s3368_s28 + $0x108] sm:$0xff]  ;;  %v265_v8 = vld [vmem:[#allocation2] sm:$0xff] }
  0x33   : > { %3101 = vmatpush3.msra.mxu1 %v315_v11  ;;  %2871 = vmatpush3.msra.mxu0 %v315_v11  ;;  %v266_v5 = vld [vmem:[#allocation2 + $0x8] sm:$0xff]  ;;  %v233_v9 = vld [vmem:[%s3368_s28] sm:$0xff] }
  0x34   : > { %3088 = vmatprep.subr.mxu1 %v314_v12  ;;  %2872 = vmatprep.subr.mxu0 %v314_v12  ;;  %v3526_v6 = vld [vmem:[%s3368_s28 + $0x88] sm:$0xff]  ;;  %v1011_v10 = vld [vmem:[#allocation2 + $0xe0] sm:$0xff] }
  0x35   : > { %3102 = vmatpush3.msra.mxu1 %v314_v12  ;;  %2873 = vmatpush3.msra.mxu0 %v314_v12  ;;  %v1012_v7 = vld [vmem:[#allocation2 + $0xe8] sm:$0xff]  ;;  %v1553_v12 = vld [vmem:[%s3541_s6] sm:$0xff] }
  0x36   : > { %3089 = vmatprep.subr.mxu1 %v313_v13  ;;  %2874 = vmatprep.subr.mxu0 %v313_v13  ;;  %v234_v11 = vld [vmem:[%s3368_s28 + $0x8] sm:$0xff] }
  0x37   : > { %3103 = vmatpush3.msra.mxu1 %v313_v13  ;;  %2900 = vmatprep.mubr.msk.f32.mxu1 %vm327_vm1, %v3371_v14 }
  0x38   : > { %2875 = vmatpush3.msra.mxu0 %v313_v13  ;;  %2876 = vmatprep.mubr.msk.f32.mxu0 %vm327_vm1, %v3374_v15  ;;  %v1555_v13 = vld [vmem:[%s3541_s6 + $0x10] sm:$0xff] }
  0x39   : > { %2901 = vmatmul.mubr.msk.f32.vlgmr.msra.gmra.mxu1 %vm327_vm1, %v3377_v16  ;;  %2924 = vmatprep.subr.msk.mxu1 %vm424_vm0, %v278_v17 }
  0x3a   : > { %2877 = vmatmul.mubr.msk.f32.vlgmr.msra.gmra.mxu0 %vm327_vm1, %v3382_v18  ;;  %2925 = vmatpush3.msk.msra.mxu1 %vm424_vm0, %v278_v17  ;;  %v1554_v17 = vld [vmem:[%s3541_s6 + $0x8] sm:$0xff] }
  0x3b   : > { %3000 = vmatprep.subr.msk.mxu0 %vm424_vm0, %v1024_v19  ;;  %2903 = vmatprep.mubr.msk.f32.mxu1 %vm327_vm1, %v3387_v20 }
  0x3c   : > { %2926 = vmatprep.subr.mxu1 %v277_v21  ;;  %3001 = vmatpush3.msk.msra.mxu0 %vm424_vm0, %v1024_v19  ;;  %v1556_v19 = vld [vmem:[%s3541_s6 + $0x18] sm:$0xff] }
  0x3d   : > { %2879 = vmatprep.mubr.msk.f32.mxu0 %vm327_vm1, %v3396_v22  ;;  %2904 = vmatmul.mubr.msk.f32.gmra.mxu1 %vm327_vm1, %v3399_v23 }
  0x3e   : > { %2927 = vmatpush3.msra.mxu1 %v277_v21  ;;  %2880 = vmatmul.mubr.msk.f32.gmra.mxu0 %vm327_vm1, %v3405_v24  ;;  %v1559_v21 = vld [vmem:[%s3541_s6 + $0x30] sm:$0xff] }
  0x3f   : > { %2928 = vmatprep.subr.mxu1 %v276_v25  ;;  %3002 = vmatprep.subr.mxu0 %v1023_v26 }
  0x40   : > { %2929 = vmatpush3.msra.mxu1 %v276_v25  ;;  %3003 = vmatpush3.msra.mxu0 %v1023_v26  ;;  %v1562_v25 = vld [vmem:[%s3541_s6 + $0x48] sm:$0xff]  ;;  %v1563_v26 = vld [vmem:[%s3541_s6 + $0x50] sm:$0xff] }
  0x41   : > { %2906 = vmatprep.mubr.msk.f32.mxu1 %vm327_vm1, %v3415_v27  ;;  %2930 = vmatprep.subr.mxu1 %v275_v28 }
  0x42   : > { %3004 = vmatprep.subr.mxu0 %v1022_v29  ;;  %2882 = vmatprep.mubr.msk.f32.mxu0 %vm327_vm1, %v3418_v30 }
  0x43   : > { %2907 = vmatmul.mubr.msk.f32.gmra.mxu1 %vm327_vm1, %v3421_v31  ;;  %3005 = vmatpush3.msra.mxu0 %v1022_v29  ;;  %v1565_v29 = vld [vmem:[%s3541_s6 + $0x60] sm:$0xff] }
  0x44   : > { %2931 = vmatpush3.msra.mxu1 %v275_v28  ;;  %2883 = vmatmul.mubr.msk.f32.gmra.mxu0 %vm327_vm1, %v3426_v32  ;;  %v1564_v28 = vld [vmem:[%s3541_s6 + $0x58] sm:$0xff] }
  0x45   : > { %3006 = vmatprep.subr.mxu0 %v1021_v33  ;;  %2932 = vmatprep.subr.mxu1 %v274_v34 }
  0x46   : > { %3007 = vmatpush3.msra.mxu0 %v1021_v33  ;;  %2909 = vmatprep.mubr.msk.f32.mxu1 %vm327_vm1, %v3433_v35  ;;  %v1568_v33 = vld [vmem:[%s3541_s6 + $0x78] sm:$0xff] }
  0x47   : > { %2933 = vmatpush3.msra.mxu1 %v274_v34  ;;  %2885 = vmatprep.mubr.msk.f32.mxu0 %vm327_vm1, %v3438_v36  ;;  %v1569_v34 = vld [vmem:[%s3541_s6 + $0x80] sm:$0xff] }
  0x48   : > { %2910 = vmatmul.mubr.msk.f32.gmra.mxu1 %vm327_vm1, %v3441_v37  ;;  %2934 = vmatprep.subr.mxu1 %v273_v38 }
  0x49   : > { %3008 = vmatprep.subr.mxu0 %v1020_v39  ;;  %2886 = vmatmul.mubr.msk.f32.gmra.mxu0 %vm327_vm1, %v3446_v40 }
  0x4a   : > { %2935 = vmatpush3.msra.mxu1 %v273_v38  ;;  %3009 = vmatpush3.msra.mxu0 %v1020_v39  ;;  %v1571_v38 = vld [vmem:[%s3541_s6 + $0x90] sm:$0xff]  ;;  %v1572_v39 = vld [vmem:[%s3541_s6 + $0x98] sm:$0xff] }
  0x4b   : > { %2936 = vmatprep.subr.mxu1 %v272_v41  ;;  %3010 = vmatprep.subr.mxu0 %v1019_v42 }
  0x4c   : > { %2912 = vmatprep.mubr.msk.f32.mxu1 %vm327_vm1, %v3455_v43  ;;  %2937 = vmatpush3.msra.mxu1 %v272_v41  ;;  %v2670_v41 = vld [vmem:[%s3368_s28 + $0x110] sm:$0xff] }
  0x4d   : > { %3011 = vmatpush3.msra.mxu0 %v1019_v42  ;;  %2888 = vmatprep.mubr.msk.f32.mxu0 %vm327_vm1, %v3458_v44  ;;  %v1582_v42 = vld [vmem:[%s3541_s6 + $0xe8] sm:$0xff] }
  0x4e   : > { %2913 = vmatmul.mubr.msk.f32.gmra.mxu1 %vm327_vm1, %v3461_v45  ;;  %2938 = vmatprep.subr.mxu1 %v271_v46 }
  0x4f   : > { %3012 = vmatprep.subr.mxu0 %v1018_v47  ;;  %2889 = vmatmul.mubr.msk.f32.gmra.mxu0 %vm327_vm1, %v3466_v48 }
  0x50   : > { %2939 = vmatpush3.msra.mxu1 %v271_v46  ;;  %3013 = vmatpush3.msra.mxu0 %v1018_v47 }
  0x51   : > { %3014 = vmatprep.subr.mxu0 %v1017_v49  ;;  %2915 = vmatprep.mubr.msk.f32.mxu1 %vm327_vm1, %v3473_v50 }
  0x52   : > { %2940 = vmatprep.subr.mxu1 %v270_v51  ;;  %3015 = vmatpush3.msra.mxu0 %v1017_v49 }
  0x53   : > { %2891 = vmatprep.mubr.msk.f32.mxu0 %vm327_vm1, %v3478_v52  ;;  %2916 = vmatmul.mubr.msk.f32.gmra.mxu1 %vm327_vm1, %v3481_v53 }
  0x54   : > { %2941 = vmatpush3.msra.mxu1 %v270_v51  ;;  %2892 = vmatmul.mubr.msk.f32.gmra.mxu0 %vm327_vm1, %v3486_v54 }
  0x55   : > { %2942 = vmatprep.subr.mxu1 %v269_v55  ;;  %3016 = vmatprep.subr.mxu0 %v1016_v56 }
  0x56   : > { %2943 = vmatpush3.msra.mxu1 %v269_v55  ;;  %3017 = vmatpush3.msra.mxu0 %v1016_v56 }
  0x57   : > { %2918 = vmatprep.mubr.msk.f32.mxu1 %vm327_vm1, %v3495_v57  ;;  %2944 = vmatprep.subr.mxu1 %v268_v58 }
  0x58   : > { %3018 = vmatprep.subr.mxu0 %v1015_v59  ;;  %2894 = vmatprep.mubr.msk.f32.mxu0 %vm327_vm1, %v3498_v60 }
  0x59   : > { %2919 = vmatmul.mubr.msk.f32.gmra.mxu1 %vm327_vm1, %v3501_v61  ;;  %3019 = vmatpush3.msra.mxu0 %v1015_v59 }
  0x5a   : > { %2945 = vmatpush3.msra.mxu1 %v268_v58  ;;  %2895 = vmatmul.mubr.msk.f32.gmra.mxu0 %vm327_vm1, %v3506_v62 }
  0x5b   : > { %3020 = vmatprep.subr.mxu0 %v1014_v63  ;;  %2946 = vmatprep.subr.mxu1 %v267_v0 }
  0x5c   : > { %3021 = vmatpush3.msra.mxu0 %v1014_v63  ;;  %2921 = vmatprep.mubr.msk.f32.mxu1 %vm327_vm1, %v3513_v1 }
  0x5d   : > { %2947 = vmatpush3.msra.mxu1 %v267_v0  ;;  %3022 = vmatprep.subr.mxu0 %v1013_v2 }
  0x5e   : > { %2897 = vmatprep.mubr.msk.f32.mxu0 %vm327_vm1, %v3518_v3  ;;  %2922 = vmatmul.mubr.msk.f32.gmra.mxu1 %vm327_vm1, %v3521_v4 }
  0x5f   : > { %2948 = vmatprep.subr.mxu1 %v266_v5  ;;  %3023 = vmatpush3.msra.mxu0 %v1013_v2 }
  0x60   : > { %2898 = vmatmul.mubr.msk.f32.gmra.mxu0 %vm327_vm1, %v3526_v6  ;;  %2949 = vmatpush3.msra.mxu1 %v266_v5 }
  0x61   : > { %3024 = vmatprep.subr.mxu0 %v1012_v7  ;;  %2950 = vmatprep.subr.mxu1 %v265_v8 }
  0x62   : > { %3025 = vmatpush3.msra.mxu0 %v1012_v7  ;;  %2951 = vmatpush3.msra.mxu1 %v265_v8 }
  0x63   : > { %2952 = vmatprep.mubr.msk.f32.mxu1 %vm327_vm1, %v233_v9  ;;  %3026 = vmatprep.subr.mxu0 %v1011_v10 }
  0x64   : > { %2953 = vmatmul.mubr.msk.f32.vlgmr.msra.gmra.mxu1 %vm327_vm1, %v234_v11  ;;  %3027 = vmatpush3.msra.mxu0 %v1011_v10  ;;  %v1420_v10 = vlaneseq }
  0x65   : > { %3028 = vmatprep.mubr.msk.f32.mxu0 %vm327_vm1, %v3396_v22  ;;  %2955 = vmatprep.mubr.msk.f32.mxu1 %vm327_vm1, %v3374_v15  ;;  %v1557_v15 = vld [vmem:[%s3541_s6 + $0x20] sm:$0xff] }
  0x66   : > { %3029 = vmatmul.mubr.msk.f32.vlgmr.msra.gmra.mxu0 %vm327_vm1, %v3405_v24  ;;  %1617 = vrot.lane.b32.xlu0 %v1553_v12, %s3299_s7 }
  0x67   : > { %3031 = vmatprep.mubr.msk.f32.mxu0 %vm327_vm1, %v3418_v30  ;;  %1621 = vrot.lane.b32.xlu1 %v1555_v13, %s3299_s7 }
  0x68   : > { %2956 = vmatmul.mubr.msk.f32.gmra.mxu1 %vm327_vm1, %v3382_v18  ;;  %v1558_v18 = vld [vmem:[%s3541_s6 + $0x28] sm:$0xff] }
  0x69   : > { %2958 = vmatprep.mubr.msk.f32.mxu1 %vm327_vm1, %v3396_v22  ;;  %v1560_v22 = vld [vmem:[%s3541_s6 + $0x38] sm:$0xff] }
  0x6a   : > { %3032 = vmatmul.mubr.msk.f32.gmra.mxu0 %vm327_vm1, %v3426_v32  ;;  %1619 = vrot.lane.b32.xlu0 %v1554_v17, %s3299_s7  ;;  %v3782_v17 = vand.u32 127, %v1420_v10 }
  0x6b   : > { %3034 = vmatprep.mubr.msk.f32.mxu0 %vm327_vm1, %v3438_v36  ;;  %1623 = vrot.lane.b32.xlu1 %v1556_v19, %s3299_s7 }
  0x6c   : > { %2959 = vmatmul.mubr.msk.f32.gmra.mxu1 %vm327_vm1, %v3405_v24  ;;  %v1561_v24 = vld [vmem:[%s3541_s6 + $0x40] sm:$0xff]  ;;  %vm1422_vm2 = vcmp.lt.s32.totalorder %v3782_v17, 96 }
  0x6d   : > { %2961 = vmatprep.mubr.msk.f32.mxu1 %vm327_vm1, %v3418_v30  ;;  %v1566_v30 = vld [vmem:[%s3541_s6 + $0x68] sm:$0xff] }
  0x6e   : > { %3035 = vmatmul.mubr.msk.f32.gmra.mxu0 %vm327_vm1, %v3446_v40  ;;  %1625 = vrot.lane.b32.xlu0 %v1557_v15, %s3299_s7 }
  0x6f   : > { %3037 = vmatprep.mubr.msk.f32.mxu0 %vm327_vm1, %v3458_v44  ;;  %1627 = vrot.lane.b32.xlu1 %v1558_v18, %s3299_s7 }
  0x70   : > { %2962 = vmatmul.mubr.msk.f32.gmra.mxu1 %vm327_vm1, %v3426_v32  ;;  %v1567_v32 = vld [vmem:[%s3541_s6 + $0x70] sm:$0xff] }
  0x71   : > { %2964 = vmatprep.mubr.msk.f32.mxu1 %vm327_vm1, %v3438_v36  ;;  %v1570_v36 = vld [vmem:[%s3541_s6 + $0x88] sm:$0xff] }
  0x72   : > { %3038 = vmatmul.mubr.msk.f32.gmra.mxu0 %vm327_vm1, %v3466_v48  ;;  %1629 = vrot.lane.b32.xlu0 %v1559_v21, %s3299_s7 }
  0x73   : > { %3040 = vmatprep.mubr.msk.f32.mxu0 %vm327_vm1, %v3478_v52  ;;  %1631 = vrot.lane.b32.xlu1 %v1560_v22, %s3299_s7  ;;  %v3790_v22 = vld [vmem:[%s4606_s3] ss:$0 sm:$0xff] }
  0x74   : > { %2965 = vmatmul.mubr.msk.f32.gmra.mxu1 %vm327_vm1, %v3446_v40  ;;  %v1581_v40 = vld [vmem:[%s3541_s6 + $0xe0] sm:$0xff] }
  0x75   : > { %2967 = vmatprep.mubr.msk.f32.mxu1 %vm327_vm1, %v3458_v44  ;;  %v1583_v44 = vld [vmem:[%s3541_s6 + $0xf0] sm:$0xff] }
  0x76   : > { %3041 = vmatmul.mubr.msk.f32.gmra.mxu0 %vm327_vm1, %v3486_v54  ;;  %1633 = vrot.lane.b32.xlu0 %v1561_v24, %s3299_s7 }
  0x77   : > { %3043 = vmatprep.mubr.msk.f32.mxu0 %vm327_vm1, %v3498_v60  ;;  %1635 = vrot.lane.b32.xlu1 %v1562_v25, %s3299_s7 }
  0x78   : > { %2968 = vmatmul.mubr.msk.f32.gmra.mxu1 %vm327_vm1, %v3466_v48 }
  0x79   : > { %2970 = vmatprep.mubr.msk.f32.mxu1 %vm327_vm1, %v3478_v52 }
  0x7a   : > { %3044 = vmatmul.mubr.msk.f32.gmra.mxu0 %vm327_vm1, %v3506_v62  ;;  %1637 = vrot.lane.b32.xlu0 %v1563_v26, %s3299_s7 }
  0x7b   : > { %3046 = vmatprep.mubr.msk.f32.mxu0 %vm327_vm1, %v3518_v3  ;;  %1639 = vrot.lane.b32.xlu1 %v1564_v28, %s3299_s7  ;;  %v3300_v28 = vmov 1.0  }
  0x7c   : > { %2971 = vmatmul.mubr.msk.f32.gmra.mxu1 %vm327_vm1, %v3486_v54 }
  0x7d   : > { %2973 = vmatprep.mubr.msk.f32.mxu1 %vm327_vm1, %v3498_v60 }
  0x7e   : > { %3047 = vmatmul.mubr.msk.f32.gmra.mxu0 %vm327_vm1, %v3526_v6  ;;  %1641 = vrot.lane.b32.xlu0 %v1565_v29, %s3299_s7  ;;  %v3794_v29 = vsel %vm1422_vm2, 0.5, %v3300_v28 }
  0x7f   : > { %3049 = vmatprep.mubr.msk.f32.mxu0 %vm327_vm1, %v3371_v14  ;;  %1643 = vrot.lane.b32.xlu1 %v1566_v30, %s3299_s7 }
  0x80   : > { %2974 = vmatmul.mubr.msk.f32.gmra.mxu1 %vm327_vm1, %v3506_v62 }
  0x81   : > { %2976 = vmatprep.mubr.msk.f32.mxu1 %vm327_vm1, %v3518_v3 }
  0x82   : > { %3050 = vmatmul.mubr.msk.f32.gmra.mxu0 %vm327_vm1, %v3377_v16  ;;  %1645 = vrot.lane.b32.xlu0 %v1567_v32, %s3299_s7 }
  0x83   : > { %3052 = vmatprep.mubr.msk.f32.mxu0 %vm327_vm1, %v3387_v20  ;;  %1647 = vrot.lane.b32.xlu1 %v1568_v33, %s3299_s7 }
  0x84   : > { %2977 = vmatmul.mubr.msk.f32.gmra.mxu1 %vm327_vm1, %v3526_v6 }
  0x85   : > { %2979 = vmatprep.mubr.msk.f32.mxu1 %vm327_vm1, %v3371_v14  ;;  %v1573_v14 = vld [vmem:[%s3541_s6 + $0xa0] sm:$0xff] }
  0x86   : > { %3053 = vmatmul.mubr.msk.f32.gmra.mxu0 %vm327_vm1, %v3399_v23  ;;  %1649 = vrot.lane.b32.xlu0 %v1569_v34, %s3299_s7 }
  0x87   : > { %3055 = vmatprep.mubr.msk.f32.mxu0 %vm327_vm1, %v3415_v27  ;;  %1651 = vrot.lane.b32.xlu1 %v1570_v36, %s3299_s7 }
  0x88   : > { %2980 = vmatmul.mubr.msk.f32.gmra.mxu1 %vm327_vm1, %v3377_v16  ;;  %v1574_v16 = vld [vmem:[%s3541_s6 + $0xa8] sm:$0xff] }
  0x89   : > { %2982 = vmatprep.mubr.msk.f32.mxu1 %vm327_vm1, %v3387_v20  ;;  %v1575_v20 = vld [vmem:[%s3541_s6 + $0xb0] sm:$0xff] }
  0x8a   : > { %3056 = vmatmul.mubr.msk.f32.gmra.mxu0 %vm327_vm1, %v3421_v31  ;;  %1653 = vrot.lane.b32.xlu0 %v1571_v38, %s3299_s7 }
  0x8b   : > { %3058 = vmatprep.mubr.msk.f32.mxu0 %vm327_vm1, %v3433_v35  ;;  %1655 = vrot.lane.b32.xlu1 %v1572_v39, %s3299_s7 }
  0x8c   : > { %2983 = vmatmul.mubr.msk.f32.gmra.mxu1 %vm327_vm1, %v3399_v23  ;;  %v1576_v23 = vld [vmem:[%s3541_s6 + $0xb8] sm:$0xff] }
  0x8d   : > { %2985 = vmatprep.mubr.msk.f32.mxu1 %vm327_vm1, %v3415_v27  ;;  %v1577_v27 = vld [vmem:[%s3541_s6 + $0xc0] sm:$0xff] }
  0x8e   : > { %3059 = vmatmul.mubr.msk.f32.gmra.mxu0 %vm327_vm1, %v3441_v37  ;;  %1657 = vrot.lane.b32.xlu0 %v1573_v14, %s3299_s7 }
  0x8f   : > { %3061 = vmatprep.mubr.msk.f32.mxu0 %vm327_vm1, %v3455_v43  ;;  %1659 = vrot.lane.b32.xlu1 %v1574_v16, %s3299_s7 }
  0x90   : > { %2986 = vmatmul.mubr.msk.f32.gmra.mxu1 %vm327_vm1, %v3421_v31  ;;  %v1578_v31 = vld [vmem:[%s3541_s6 + $0xc8] sm:$0xff] }
  0x91   : > { %2988 = vmatprep.mubr.msk.f32.mxu1 %vm327_vm1, %v3433_v35  ;;  %v1579_v35 = vld [vmem:[%s3541_s6 + $0xd0] sm:$0xff] }
  0x92   : > { %3062 = vmatmul.mubr.msk.f32.gmra.mxu0 %vm327_vm1, %v3461_v45  ;;  %1661 = vrot.lane.b32.xlu0 %v1575_v20, %s3299_s7 }
  0x93   : > { %3064 = vmatprep.mubr.msk.f32.mxu0 %vm327_vm1, %v3473_v50  ;;  %1663 = vrot.lane.b32.xlu1 %v1576_v23, %s3299_s7 }
  0x94   : > { %2989 = vmatmul.mubr.msk.f32.gmra.mxu1 %vm327_vm1, %v3441_v37  ;;  %v1580_v37 = vld [vmem:[%s3541_s6 + $0xd8] sm:$0xff] }
  0x95   : > { %2991 = vmatprep.mubr.msk.f32.mxu1 %vm327_vm1, %v3455_v43  ;;  %v2671_v43 = vld [vmem:[%s3368_s28 + $0x118] sm:$0xff] }
  0x96   : > { %3065 = vmatmul.mubr.msk.f32.gmra.mxu0 %vm327_vm1, %v3481_v53  ;;  %1665 = vrot.lane.b32.xlu0 %v1577_v27, %s3299_s7 }
  0x97   : > { %3067 = vmatprep.mubr.msk.f32.mxu0 %vm327_vm1, %v3495_v57  ;;  %1667 = vrot.lane.b32.xlu1 %v1578_v31, %s3299_s7 }
  0x98   : > { %2992 = vmatmul.mubr.msk.f32.gmra.mxu1 %vm327_vm1, %v3461_v45  ;;  %v1584_v45 = vld [vmem:[%s3541_s6 + $0xf8] sm:$0xff] }
  0x99   : > { %2994 = vmatprep.mubr.msk.f32.mxu1 %vm327_vm1, %v3473_v50 }
  0x9a   : > { %3068 = vmatmul.mubr.msk.f32.gmra.mxu0 %vm327_vm1, %v3501_v61  ;;  %1669 = vrot.lane.b32.xlu0 %v1579_v35, %s3299_s7 }
  0x9b   : > { %3070 = vmatprep.mubr.msk.f32.mxu0 %vm327_vm1, %v3513_v1  ;;  %1671 = vrot.lane.b32.xlu1 %v1580_v37, %s3299_s7 }
  0x9c   : > { %2995 = vmatmul.mubr.msk.f32.gmra.mxu1 %vm327_vm1, %v3481_v53 }
  0x9d   : > { %2997 = vmatprep.mubr.msk.f32.mxu1 %vm327_vm1, %v3495_v57 }
  0x9e   : > { %3071 = vmatmul.mubr.msk.f32.gmra.mxu0 %vm327_vm1, %v3521_v4  ;;  %1673 = vrot.lane.b32.xlu0 %v1581_v40, %s3299_s7 }
  0x9f   : > { %3073 = vmatprep.mubr.msk.f32.mxu0 %vm327_vm1, %v2670_v41  ;;  %1675 = vrot.lane.b32.xlu1 %v1582_v42, %s3299_s7 }
  0xa0   : > { %2998 = vmatmul.mubr.msk.f32.gmra.mxu1 %vm327_vm1, %v3501_v61 }
  0xa2   : > { %3074 = vmatmul.mubr.msk.f32.gmra.mxu0 %vm327_vm1, %v2671_v43  ;;  %1677 = vrot.lane.b32.xlu0 %v1583_v44, %s3299_s7 }
  0xa3   : > { %1679 = vrot.lane.b32.xlu1 %v1584_v45, %s3299_s7 }
  0xf9   : > { %v3734_v46 = vpop.f32.mrf.mxu1 }
  0xfa   : > { %v2878_v47 = vpop.f32.mrf.mxu0 }
  0xfb   : > { %v3736_v48 = vpop.f32.mrf.mxu1 }
  0xfc   : > { %v494_v49 = vpop.f32.mrf.mxu0 }
  0xfd   : > { %v3738_v50 = vpop.f32.mrf.mxu1 }
  0xfe   : > { %v2881_v51 = vpop.f32.mrf.mxu0 }
  0xff   : > { %v3740_v52 = vpop.f32.mrf.mxu1 }
 0x100   : > { %v504_v53 = vpop.f32.mrf.mxu0 }
 0x103   : > { %v3742_v54 = vpop.f32.mrf.mxu1 }
 0x104   : > { %v2884_v55 = vpop.f32.mrf.mxu0 }
 0x105   : > { %v3744_v56 = vpop.f32.mrf.mxu1 }
 0x106   : > { %v514_v57 = vpop.f32.mrf.mxu0 }
 0x108   : > { %v3746_v58 = vpop.f32.mrf.mxu1 }
 0x109   : > { %v2887_v59 = vpop.f32.mrf.mxu0 }
 0x10a   : > { %v3748_v60 = vpop.f32.mrf.mxu1 }
 0x10b   : > { %v3750_v61 = vpop.f32.mrf.mxu0 }
 0x10e   : > { %v3752_v62 = vpop.f32.mrf.mxu1 }
 0x10f   : > { %v3754_v63 = vpop.f32.mrf.mxu0 }
 0x110   : > { %v3756_v0 = vpop.f32.mrf.mxu1 }
 0x111   : > { %v3758_v1 = vpop.f32.mrf.mxu0 }
 0x113   : > { %v3760_v2 = vpop.f32.mrf.mxu1 }
 0x114   : > { %v3762_v3 = vpop.f32.mrf.mxu0 }
 0x115   : > { %v3764_v4 = vpop.f32.mrf.mxu1 }
 0x116   : > { %v3766_v5 = vpop.f32.mrf.mxu0 }
 0x119   : > { %v3768_v6 = vpop.f32.mrf.mxu1 }
 0x11a   : > { %v3770_v7 = vpop.f32.mrf.mxu0 }
 0x11b   : > { %v3772_v8 = vpop.f32.mrf.mxu1 }
 0x11c   : > { %v3774_v9 = vpop.f32.mrf.mxu0 }
 0x11e   : > { %v3776_v11 = vpop.f32.mrf.mxu1 }
 0x120   : > { %v3778_v12 = vpop.f32.mrf.mxu0  ;;  %v3780_v13 = vpop.f32.mrf.mxu1 }
 0x122   : > { %v3784_v19 = vpop.f32.mrf.mxu0 }
 0x124   : > { %v2954_v15 = vpop.f32.mrf.mxu1 }
 0x125   : > { %v824_v18 = vadd.f32 %v2954_v15, %v2878_v47 }
 0x126   : > { %v3030_v21 = vpop.f32.mrf.mxu0  ;;  %v818_v24 = vpop.f32.mrf.mxu1 }
 0x127   : > { %v1350_v25 = vadd.f32 %v3030_v21, %v824_v18  ;;  %v819_v26 = vadd.f32 %v818_v24, %v494_v49 }
 0x128   : > { %v1190_v30 = vpop.f32.mrf.mxu0  ;;  %v2957_v32 = vpop.f32.mrf.mxu1 }
 0x129   : > { %v1389_v33 = vadd.f32 %v3790_v22, %v1350_v25  ;;  %v1349_v34 = vadd.f32 %v1190_v30, %v819_v26  ;;  %v834_v36 = vadd.f32 %v2957_v32, %v2881_v51 }
 0x12a   : > { %v3033_v38 = vpop.f32.mrf.mxu0  ;;  %v828_v39 = vpop.f32.mrf.mxu1 }
 0x12b   : > { %v1426_v14 = vmul.f32 %v3794_v29, %v1389_v33  ;;  %v1388_v16 = vadd.f32 %v3790_v22, %v1349_v34  ;;  %v1352_v20 = vadd.f32 %v3033_v38, %v834_v36  ;;  %v829_v23 = vadd.f32 %v828_v39, %v504_v53 }
 0x12c   : > { %v1200_v27 = vpop.f32.mrf.mxu0  ;;  %v2960_v31 = vpop.f32.mrf.mxu1 }
 0x12d   : > { %3130 = vtanh.f32 %v1426_v14  ;;  %v1425_v35 = vmul.f32 %v3794_v29, %v1388_v16  ;;  %v1391_v37 = vadd.f32 %v3790_v22, %v1352_v20  ;;  %v1351_v40 = vadd.f32 %v1200_v27, %v829_v23 }
 0x12e   : > { %v844_v41 = vadd.f32 %v2960_v31, %v2884_v55  ;;  %v3036_v42 = vpop.f32.mrf.mxu0  ;;  %v838_v43 = vpop.f32.mrf.mxu1 }
 0x12f   : > { %3132 = vtanh.f32 %v1425_v35  ;;  %v1428_v44 = vmul.f32 %v3794_v29, %v1391_v37  ;;  %v1390_v45 = vadd.f32 %v3790_v22, %v1351_v40  ;;  %v839_v47 = vadd.f32 %v838_v43, %v514_v57 }
 0x130   : > { %v1354_v49 = vadd.f32 %v3036_v42, %v844_v41  ;;  %v1210_v51 = vpop.f32.mrf.mxu0  ;;  %v2963_v53 = vpop.f32.mrf.mxu1 }
 0x131   : > { %3134 = vtanh.f32 %v1428_v44  ;;  %v1427_v10 = vmul.f32 %v3794_v29, %v1390_v45  ;;  %v1353_v15 = vadd.f32 %v1210_v51, %v839_v47  ;;  %v854_v18 = vadd.f32 %v2963_v53, %v2887_v59 }
 0x132   : > { %v1393_v21 = vadd.f32 %v3790_v22, %v1354_v49  ;;  %v3039_v24 = vpop.f32.mrf.mxu0  ;;  %v848_v55 = vpop.f32.mrf.mxu1  ;;  %v3301_v45 = vmov 0.0  }
 0x133   : > { %3136 = vtanh.f32 %v1427_v10  ;;  %v1392_v25 = vadd.f32 %v3790_v22, %v1353_v15  ;;  %v1356_v26 = vadd.f32 %v3039_v24, %v854_v18  ;;  %v849_v28 = vadd.f32 %v848_v55, %v3750_v61 }
 0x134   : > { %v1430_v57 = vmul.f32 %v3794_v29, %v1393_v21  ;;  %v1220_v30 = vpop.f32.mrf.mxu0  ;;  %v2966_v32 = vpop.f32.mrf.mxu1 }
 0x135   : > { %v1429_v33 = vmul.f32 %v3794_v29, %v1392_v25  ;;  %v1395_v34 = vadd.f32 %v3790_v22, %v1356_v26  ;;  %v1355_v36 = vadd.f32 %v1220_v30, %v849_v28  ;;  %v864_v59 = vadd.f32 %v2966_v32, %v3754_v63 }
 0x136   : > { %3138 = vtanh.f32 %v1430_v57  ;;  %v3042_v38 = vpop.f32.mrf.mxu0  ;;  %v858_v39 = vpop.f32.mrf.mxu1 }
 0x137   : > { %3140 = vtanh.f32 %v1429_v33  ;;  %v1432_v14 = vmul.f32 %v3794_v29, %v1395_v34  ;;  %v1394_v16 = vadd.f32 %v3790_v22, %v1355_v36  ;;  %v1358_v61 = vadd.f32 %v3042_v38, %v864_v59 }
 0x138   : > { %v859_v20 = vadd.f32 %v858_v39, %v3758_v1  ;;  %v1230_v23 = vpop.f32.mrf.mxu0  ;;  %v2969_v27 = vpop.f32.mrf.mxu1  ;;  %v3820_v1 = vsel %vm1422_vm2, 0.5, %v3301_v45 }
 0x139   : > { %3142 = vtanh.f32 %v1432_v14  ;;  %v1431_v31 = vmul.f32 %v3794_v29, %v1394_v16  ;;  %v1397_v35 = vadd.f32 %v3790_v22, %v1358_v61  ;;  %v874_v63 = vadd.f32 %v2969_v27, %v3762_v3 }
 0x13a   : > { %v3131_v37 = vpop.eup %3130  ;;  %v1357_v40 = vadd.f32 %v1230_v23, %v859_v20  ;;  %v3045_v41 = vpop.f32.mrf.mxu0 }
 0x13b   : > { %v868_v42 = vpop.f32.mrf.mxu1  ;;  %v1434_v43 = vmul.f32 %v3794_v29, %v1397_v35  ;;  %v1360_v44 = vadd.f32 %v3045_v41, %v874_v63  ;;  %3144 = vtanh.f32 %v1431_v31  ;;  %v1490_v10 = vmul.f32 %v3131_v37, %v3794_v29 }
 0x13c   : > { %v869_v47 = vadd.f32 %v868_v42, %v3766_v5  ;;  %v3133_v49 = vpop.eup %3132  ;;  %v1396_v51 = vadd.f32 %v3790_v22, %v1357_v40  ;;  %v1240_v53 = vpop.f32.mrf.mxu0 }
 0x13d   : > { %v2972_v3 = vpop.f32.mrf.mxu1  ;;  %3146 = vtanh.f32 %v1434_v43  ;;  %v1399_v15 = vadd.f32 %v3790_v22, %v1360_v44  ;;  %v1489_v18 = vmul.f32 %v3133_v49, %v3794_v29  ;;  %v3830_v25 = vadd.f32 %v1490_v10, %v3820_v1 }
 0x13e   : > { %v1359_v21 = vadd.f32 %v1240_v53, %v869_v47  ;;  %v3135_v24 = vpop.eup %3134  ;;  %v1433_v17 = vmul.f32 %v3794_v29, %v1396_v51  ;;  %v884_v55 = vadd.f32 %v2972_v3, %v3770_v7  ;;  %v3048_v5 = vpop.f32.mrf.mxu0 }
 0x13f   : > { %v878_v26 = vpop.f32.mrf.mxu1  ;;  %v1436_v28 = vmul.f32 %v3794_v29, %v1399_v15  ;;  %v3834_v57 = vadd.f32 %v1489_v18, %v3820_v1  ;;  %1779 = vrot.lane.b32.xlu1 %v3830_v25, %s3299_s7  ;;  %v1492_v59 = vmul.f32 %v3135_v24, %v3794_v29 }
 0x140   : > { %v1398_v30 = vadd.f32 %v3790_v22, %v1359_v21  ;;  %v879_v32 = vadd.f32 %v878_v26, %v3774_v9  ;;  %v3137_v33 = vpop.eup %3136  ;;  %3148 = vtanh.f32 %v1433_v17  ;;  %v1362_v34 = vadd.f32 %v3048_v5, %v884_v55  ;;  %v1250_v36 = vpop.f32.mrf.mxu0 }
 0x141   : > { %v2975_v7 = vpop.f32.mrf.mxu1  ;;  %3150 = vtanh.f32 %v1436_v28  ;;  %v1491_v39 = vmul.f32 %v3137_v33, %v3794_v29  ;;  %1777 = vrot.lane.b32.xlu0 %v3834_v57, %s3299_s7  ;;  %v3848_v20 = vadd.f32 %v1492_v59, %v3820_v1 }
 0x142   : > { %v1435_v38 = vmul.f32 %v3794_v29, %v1398_v30  ;;  %v1401_v9 = vadd.f32 %v3790_v22, %v1362_v34  ;;  %v1361_v14 = vadd.f32 %v1250_v36, %v879_v32  ;;  %v894_v16 = vadd.f32 %v2975_v7, %v3778_v12  ;;  %v3051_v61 = vpop.f32.mrf.mxu0 }
 0x143   : > { %v888_v23 = vpop.f32.mrf.mxu1  ;;  %v3139_v27 = vpop.eup %3138  ;;  %v3851_v31 = vadd.f32 %v1491_v39, %v3820_v1  ;;  %1783 = vrot.lane.b32.xlu1 %v3848_v20, %s3299_s7 }
 0x144   : > { %3152 = vtanh.f32 %v1435_v38  ;;  %v889_v35 = vadd.f32 %v888_v23, %v3784_v19  ;;  %v3141_v63 = vpop.eup %3140  ;;  %v1438_v37 = vmul.f32 %v3794_v29, %v1401_v9  ;;  %v1400_v40 = vadd.f32 %v3790_v22, %v1361_v14  ;;  %v1260_v42 = vpop.f32.mrf.mxu0 }
 0x145   : > { %v1364_v41 = vadd.f32 %v3051_v61, %v894_v16  ;;  %v2978_v12 = vpop.f32.mrf.mxu1  ;;  %1781 = vrot.lane.b32.xlu0 %v3851_v31, %s3299_s7  ;;  %v1494_v45 = vmul.f32 %v3139_v27, %v3794_v29  ;;  %v1493_v3 = vmul.f32 %v3141_v63, %v3794_v29 }
 0x146   : > { %v1363_v43 = vadd.f32 %v1260_v42, %v889_v35  ;;  %v904_v44 = vadd.f32 %v2978_v12, %v3734_v46  ;;  %v3143_v19 = vpop.eup %3142  ;;  %3154 = vtanh.f32 %v1438_v37  ;;  %v1437_v47 = vmul.f32 %v3794_v29, %v1400_v40  ;;  %v3054_v51 = vpop.f32.mrf.mxu0 }
 0x147   : > { %v1403_v49 = vadd.f32 %v3790_v22, %v1364_v41  ;;  %v898_v53 = vpop.f32.mrf.mxu1  ;;  %v3867_v46 = vadd.f32 %v1494_v45, %v3820_v1  ;;  %v3872_v17 = vadd.f32 %v1493_v3, %v3820_v1  ;;  %v1496_v5 = vmul.f32 %v3143_v19, %v3794_v29 }
 0x148   : > { %v1402_v10 = vadd.f32 %v3790_v22, %v1363_v43  ;;  %v1366_v15 = vadd.f32 %v3054_v51, %v904_v44  ;;  %v899_v18 = vadd.f32 %v898_v53, %v3736_v48  ;;  %3156 = vtanh.f32 %v1437_v47  ;;  %v1270_v24 = vpop.f32.mrf.mxu0  ;;  %v3145_v26 = vpop.eup %3144 }
 0x149   : > { %v1440_v21 = vmul.f32 %v3794_v29, %v1403_v49  ;;  %v2981_v55 = vpop.f32.mrf.mxu1  ;;  %1787 = vrot.lane.b32.xlu1 %v3867_v46, %s3299_s7  ;;  %1785 = vrot.lane.b32.xlu0 %v3872_v17, %s3299_s7  ;;  %v3883_v36 = vadd.f32 %v1496_v5, %v3820_v1  ;;  %v1495_v16 = vmul.f32 %v3145_v26, %v3794_v29  ;;  %v3917_v26 = vpop.permute.xlu1 %1621 }
 0x14a   : > { %v1439_v28 = vmul.f32 %v3794_v29, %v1402_v10  ;;  %v1405_v30 = vadd.f32 %v3790_v22, %v1366_v15  ;;  %v1365_v32 = vadd.f32 %v1270_v24, %v899_v18  ;;  %v3147_v48 = vpop.eup %3146  ;;  %v914_v33 = vadd.f32 %v2981_v55, %v3738_v50  ;;  %v3057_v34 = vpop.f32.mrf.mxu0 }
 0x14b   : > { %3158 = vtanh.f32 %v1440_v21  ;;  %v908_v7 = vpop.f32.mrf.mxu1  ;;  %v1498_v61 = vmul.f32 %v3147_v48, %v3794_v29  ;;  %v3896_v40 = vadd.f32 %v1495_v16, %v3820_v1 }
 0x14c   : > { %3160 = vtanh.f32 %v1439_v28  ;;  %v1442_v59 = vmul.f32 %v3794_v29, %v1405_v30  ;;  %v1404_v38 = vadd.f32 %v3790_v22, %v1365_v32  ;;  %v909_v39 = vadd.f32 %v908_v7, %v3740_v52  ;;  %v1280_v14 = vpop.f32.mrf.mxu0 }
 0x14d   : > { %v1368_v9 = vadd.f32 %v3057_v34, %v914_v33  ;;  %v2984_v50 = vpop.f32.mrf.mxu1  ;;  %v3149_v23 = vpop.eup %3148  ;;  %1791 = vrot.lane.b32.xlu1 %v3883_v36, %s3299_s7  ;;  %v3899_v42 = vadd.f32 %v1498_v61, %v3820_v1  ;;  %1789 = vrot.lane.b32.xlu0 %v3896_v40, %s3299_s7 }
 0x14e   : > { %3162 = vtanh.f32 %v1442_v59  ;;  %v1441_v27 = vmul.f32 %v3794_v29, %v1404_v38  ;;  %v1367_v35 = vadd.f32 %v1280_v14, %v909_v39  ;;  %v924_v63 = vadd.f32 %v2984_v50, %v3742_v54  ;;  %v3151_v37 = vpop.eup %3150  ;;  %v3060_v41 = vpop.f32.mrf.mxu0 }
 0x14f   : > { %v1407_v52 = vadd.f32 %v3790_v22, %v1368_v9  ;;  %v918_v12 = vpop.f32.mrf.mxu1  ;;  %v1497_v43 = vmul.f32 %v3149_v23, %v3794_v29  ;;  %v1500_v21 = vmul.f32 %v3151_v37, %v3794_v29 }
 0x150   : > { %3164 = vtanh.f32 %v1441_v27  ;;  %v1406_v44 = vadd.f32 %v3790_v22, %v1367_v35  ;;  %v1370_v45 = vadd.f32 %v3060_v41, %v924_v63  ;;  %v919_v19 = vadd.f32 %v918_v12, %v3744_v56  ;;  %v1290_v49 = vpop.f32.mrf.mxu0  ;;  %v3939_v27 = vpop.permute.xlu0 %1617 }
 0x151   : > { %v3153_v54 = vpop.eup %3152  ;;  %v1444_v47 = vmul.f32 %v3794_v29, %v1407_v52  ;;  %v3908_v51 = vadd.f32 %v1497_v43, %v3820_v1  ;;  %v2987_v53 = vpop.f32.mrf.mxu1  ;;  %1795 = vrot.lane.b32.xlu1 %v3899_v42, %s3299_s7 }
 0x152   : > { %v1443_v3 = vmul.f32 %v3794_v29, %v1406_v44  ;;  %v1409_v10 = vadd.f32 %v3790_v22, %v1370_v45  ;;  %v1369_v15 = vadd.f32 %v1290_v49, %v919_v19  ;;  %v934_v56 = vadd.f32 %v2987_v53, %v3746_v58  ;;  %v3063_v18 = vpop.f32.mrf.mxu0  ;;  %v3948_v45 = vpop.permute.xlu1 %1623 }
 0x153   : > { %3166 = vtanh.f32 %v1444_v47  ;;  %v928_v24 = vpop.f32.mrf.mxu1  ;;  %v1499_v55 = vmul.f32 %v3153_v54, %v3794_v29  ;;  %v3155_v5 = vpop.eup %3154  ;;  %1793 = vrot.lane.b32.xlu0 %v3908_v51, %s3299_s7  ;;  %v3924_v58 = vadd.f32 %v1500_v21, %v3820_v1 }
 0x154   : > { %3168 = vtanh.f32 %v1443_v3  ;;  %v1446_v28 = vmul.f32 %v3794_v29, %v1409_v10  ;;  %v1408_v30 = vadd.f32 %v3790_v22, %v1369_v15  ;;  %v1372_v32 = vadd.f32 %v3063_v18, %v934_v56  ;;  %v1300_v33 = vpop.f32.mrf.mxu0 }
 0x155   : > { %v929_v48 = vadd.f32 %v928_v24, %v3748_v60  ;;  %v3928_v34 = vadd.f32 %v1499_v55, %v3820_v1  ;;  %v2990_v7 = vpop.f32.mrf.mxu1  ;;  %v1502_v59 = vmul.f32 %v3155_v5, %v3794_v29  ;;  %v3157_v38 = vpop.eup %3156  ;;  %1799 = vrot.lane.b32.xlu1 %v3924_v58, %s3299_s7 }
 0x156   : > { %3170 = vtanh.f32 %v1446_v28  ;;  %v1445_v39 = vmul.f32 %v3794_v29, %v1408_v30  ;;  %v1411_v9 = vadd.f32 %v3790_v22, %v1372_v32  ;;  %v944_v14 = vadd.f32 %v2990_v7, %v3752_v62  ;;  %v3066_v60 = vpop.f32.mrf.mxu0  ;;  %v3970_v32 = vpop.permute.xlu0 %1619 }
 0x157   : > { %v1371_v16 = vadd.f32 %v1300_v33, %v929_v48  ;;  %v3937_v50 = vadd.f32 %v1502_v59, %v3820_v1  ;;  %v938_v61 = vpop.f32.mrf.mxu1  ;;  %1797 = vrot.lane.b32.xlu0 %v3928_v34, %s3299_s7  ;;  %v1501_v12 = vmul.f32 %v3157_v38, %v3794_v29 }
 0x158   : > { %v3159_v23 = vpop.eup %3158  ;;  %3172 = vtanh.f32 %v1445_v39  ;;  %v1448_v35 = vmul.f32 %v3794_v29, %v1411_v9  ;;  %v1374_v63 = vadd.f32 %v3066_v60, %v944_v14  ;;  %v939_v37 = vadd.f32 %v938_v61, %v3756_v0  ;;  %v1310_v41 = vpop.f32.mrf.mxu0 }
 0x159   : > { %v3161_v52 = vpop.eup %3160  ;;  %v1410_v62 = vadd.f32 %v3790_v22, %v1371_v16  ;;  %v2993_v43 = vpop.f32.mrf.mxu1  ;;  %v1504_v44 = vmul.f32 %v3159_v23, %v3794_v29  ;;  %1803 = vrot.lane.b32.xlu1 %v3937_v50, %s3299_s7  ;;  %v3956_v53 = vadd.f32 %v1501_v12, %v3820_v1 }
 0x15a   : > { %3174 = vtanh.f32 %v1448_v35  ;;  %v1413_v19 = vadd.f32 %v3790_v22, %v1374_v63  ;;  %v1373_v54 = vadd.f32 %v1310_v41, %v939_v37  ;;  %v954_v0 = vadd.f32 %v2993_v43, %v3760_v2  ;;  %v3069_v3 = vpop.f32.mrf.mxu0  ;;  %v3979_v16 = vpop.permute.xlu1 %1627 }
 0x15b   : > { %v3163_v47 = vpop.eup %3162  ;;  %v1447_v49 = vmul.f32 %v3794_v29, %v1410_v62  ;;  %v3959_v10 = vadd.f32 %v1504_v44, %v3820_v1  ;;  %v948_v15 = vpop.f32.mrf.mxu1  ;;  %v1503_v56 = vmul.f32 %v3161_v52, %v3794_v29  ;;  %1801 = vrot.lane.b32.xlu0 %v3956_v53, %s3299_s7 }
 0x15c   : > { %v1450_v18 = vmul.f32 %v3794_v29, %v1413_v19  ;;  %v1412_v2 = vadd.f32 %v3790_v22, %v1373_v54  ;;  %v1376_v21 = vadd.f32 %v3069_v3, %v954_v0  ;;  %v949_v24 = vadd.f32 %v948_v15, %v3764_v4  ;;  %v1320_v5 = vpop.f32.mrf.mxu0  ;;  %v3993_v12 = vpop.permute.xlu0 %1625 }
 0x15d   : > { %v3165_v55 = vpop.eup %3164  ;;  %3176 = vtanh.f32 %v1447_v49  ;;  %v3968_v28 = vadd.f32 %v1503_v56, %v3820_v1  ;;  %v2996_v30 = vpop.f32.mrf.mxu1  ;;  %1807 = vrot.lane.b32.xlu1 %v3959_v10, %s3299_s7  ;;  %v1506_v38 = vmul.f32 %v3163_v47, %v3794_v29 }
 0x15e   : > { %3178 = vtanh.f32 %v1450_v18  ;;  %v1449_v48 = vmul.f32 %v3794_v29, %v1412_v2  ;;  %v1415_v33 = vadd.f32 %v3790_v22, %v1376_v21  ;;  %v1375_v7 = vadd.f32 %v1320_v5, %v949_v24  ;;  %v3072_v59 = vpop.f32.mrf.mxu0 }
 0x15f   : > { %v964_v4 = vadd.f32 %v2996_v30, %v3768_v6  ;;  %v958_v39 = vpop.f32.mrf.mxu1  ;;  %v1505_v9 = vmul.f32 %v3165_v55, %v3794_v29  ;;  %1805 = vrot.lane.b32.xlu0 %v3968_v28, %s3299_s7  ;;  %v3987_v6 = vadd.f32 %v1506_v38, %v3820_v1 }
 0x160   : > { %v3167_v14 = vpop.eup %3166  ;;  %3180 = vtanh.f32 %v1449_v48  ;;  %v1452_v60 = vmul.f32 %v3794_v29, %v1415_v33  ;;  %v1414_v61 = vadd.f32 %v3790_v22, %v1375_v7  ;;  %v959_v23 = vadd.f32 %v958_v39, %v3772_v8  ;;  %v1330_v37 = vpop.f32.mrf.mxu0 }
 0x161   : > { %v3169_v35 = vpop.eup %3168  ;;  %v1378_v63 = vadd.f32 %v3072_v59, %v964_v4  ;;  %v3990_v52 = vadd.f32 %v1505_v9, %v3820_v1  ;;  %v2999_v62 = vpop.f32.mrf.mxu1  ;;  %v1508_v41 = vmul.f32 %v3167_v14, %v3794_v29  ;;  %1811 = vrot.lane.b32.xlu1 %v3987_v6, %s3299_s7 }
 0x162   : > { %3182 = vtanh.f32 %v1452_v60  ;;  %v1451_v8 = vmul.f32 %v3794_v29, %v1414_v61  ;;  %v1377_v43 = vadd.f32 %v1330_v37, %v959_v23  ;;  %v974_v44 = vadd.f32 %v2999_v62, %v3776_v11  ;;  %v3075_v0 = vpop.f32.mrf.mxu0  ;;  %v4023_v59 = vpop.permute.xlu0 %1629 }
 0x163   : > { %v3171_v19 = vpop.eup %3170  ;;  %v1417_v54 = vadd.f32 %v3790_v22, %v1378_v63  ;;  %v4001_v47 = vadd.f32 %v1508_v41, %v3820_v1  ;;  %v968_v49 = vpop.f32.mrf.mxu1  ;;  %1809 = vrot.lane.b32.xlu0 %v3990_v52, %s3299_s7  ;;  %v1507_v21 = vmul.f32 %v3169_v35, %v3794_v29 }
 0x164   : > { %3184 = vtanh.f32 %v1451_v8  ;;  %v1416_v3 = vadd.f32 %v3790_v22, %v1377_v43  ;;  %v1380_v15 = vadd.f32 %v3075_v0, %v974_v44  ;;  %v969_v56 = vadd.f32 %v968_v49, %v3780_v13  ;;  %v1340_v2 = vpop.f32.mrf.mxu0  ;;  %v4013_v13 = vpop.permute.xlu1 %1631 }
 0x165   : > { %v3173_v18 = vpop.eup %3172  ;;  %v1454_v11 = vmul.f32 %v3794_v29, %v1417_v54  ;;  %v1510_v24 = vmul.f32 %v3171_v19, %v3794_v29  ;;  %1815 = vrot.lane.b32.xlu1 %v4001_v47, %s3299_s7  ;;  %v4018_v7 = vadd.f32 %v1507_v21, %v3820_v1 }
 0x166   : > { %v1453_v55 = vmul.f32 %v3794_v29, %v1416_v3  ;;  %v1419_v5 = vadd.f32 %v3790_v22, %v1380_v15  ;;  %v1379_v30 = vadd.f32 %v1340_v2, %v969_v56  ;;  %v1509_v48 = vmul.f32 %v3173_v18, %v3794_v29  ;;  %v4048_v8 = vpop.permute.xlu0 %1633 }
 0x167   : > { %v3175_v33 = vpop.eup %3174  ;;  %3186 = vtanh.f32 %v1454_v11  ;;  %v4021_v4 = vadd.f32 %v1510_v24, %v3820_v1  ;;  %1813 = vrot.lane.b32.xlu0 %v4018_v7, %s3299_s7 }
 0x168   : > { %3188 = vtanh.f32 %v1453_v55  ;;  %v1456_v38 = vmul.f32 %v3794_v29, %v1419_v5  ;;  %v1418_v39 = vadd.f32 %v3790_v22, %v1379_v30  ;;  %v4030_v9 = vadd.f32 %v1509_v48, %v3820_v1  ;;  %v4041_v62 = vpop.permute.xlu1 %1635 }
 0x169   : > { %v1512_v14 = vmul.f32 %v3175_v33, %v3794_v29  ;;  %1819 = vrot.lane.b32.xlu1 %v4021_v4, %s3299_s7 }
 0x16a   : > { %v3177_v60 = vpop.eup %3176  ;;  %3190 = vtanh.f32 %v1456_v38  ;;  %v1455_v61 = vmul.f32 %v3794_v29, %v1418_v39  ;;  %v4070_v11 = vpop.permute.xlu0 %1637 }
 0x16b   : > { %v3179_v23 = vpop.eup %3178  ;;  %v4037_v35 = vadd.f32 %v1512_v14, %v3820_v1  ;;  %v1511_v22 = vmul.f32 %v3177_v60, %v3794_v29  ;;  %1817 = vrot.lane.b32.xlu0 %v4030_v9, %s3299_s7 }
 0x16c   : > { %3192 = vtanh.f32 %v1455_v61  ;;  %v1514_v63 = vmul.f32 %v3179_v23, %v3794_v29  ;;  %v4063_v15 = vpop.permute.xlu1 %1639 }
 0x16d   : > { %v3181_v37 = vpop.eup %3180  ;;  %v4046_v41 = vadd.f32 %v1511_v22, %v3820_v1  ;;  %1823 = vrot.lane.b32.xlu1 %v4037_v35, %s3299_s7 }
 0x16e   : > { %v1513_v43 = vmul.f32 %v3181_v37, %v3794_v29  ;;  %v4054_v19 = vadd.f32 %v1514_v63, %v3820_v1  ;;  %v4092_v14 = vpop.permute.xlu0 %1641 }
 0x16f   : > { %v3183_v44 = vpop.eup %3182  ;;  %1821 = vrot.lane.b32.xlu0 %v4046_v41, %s3299_s7 }
 0x170   : > { %v1516_v54 = vmul.f32 %v3183_v44, %v3794_v29  ;;  %v4060_v49 = vadd.f32 %v1513_v43, %v3820_v1  ;;  %v4085_v38 = vpop.permute.xlu1 %1643 }
 0x171   : > { %v3185_v0 = vpop.eup %3184  ;;  %1827 = vrot.lane.b32.xlu1 %v4054_v19, %s3299_s7 }
 0x172   : > { %v1515_v3 = vmul.f32 %v3185_v0, %v3794_v29  ;;  %v4068_v56 = vadd.f32 %v1516_v54, %v3820_v1  ;;  %v4109_v63 = vpop.permute.xlu0 %1645 }
 0x173   : > { %1825 = vrot.lane.b32.xlu0 %v4060_v49, %s3299_s7 }
 0x174   : > { %v3187_v18 = vpop.eup %3186  ;;  %v4075_v21 = vadd.f32 %v1515_v3, %v3820_v1  ;;  %v4105_v22 = vpop.permute.xlu1 %1647 }
 0x175   : > { %v3189_v2 = vpop.eup %3188  ;;  %v1518_v24 = vmul.f32 %v3187_v18, %v3794_v29  ;;  %1831 = vrot.lane.b32.xlu1 %v4068_v56, %s3299_s7 }
 0x176   : > { %v1517_v55 = vmul.f32 %v3189_v2, %v3794_v29  ;;  %v4115_v37 = vpop.permute.xlu0 %1649 }
 0x177   : > { %v3191_v5 = vpop.eup %3190  ;;  %v4082_v30 = vadd.f32 %v1518_v24, %v3820_v1  ;;  %1829 = vrot.lane.b32.xlu0 %v4075_v21, %s3299_s7 }
 0x178   : > { %v1520_v48 = vmul.f32 %v3191_v5, %v3794_v29  ;;  %v4090_v39 = vadd.f32 %v1517_v55, %v3820_v1 }
 0x179   : > { %v3193_v33 = vpop.eup %3192  ;;  %1835 = vrot.lane.b32.xlu1 %v4082_v30, %s3299_s7 }
 0x17a   : > { %v1519_v60 = vmul.f32 %v3193_v33, %v3794_v29  ;;  %v4098_v61 = vadd.f32 %v1520_v48, %v3820_v1  ;;  %v4113_v29 = vpop.permute.xlu1 %1651 }
 0x17b   : > { %1833 = vrot.lane.b32.xlu0 %v4090_v39, %s3299_s7 }
 0x17c   : > { %v4101_v23 = vadd.f32 %v1519_v60, %v3820_v1  ;;  %v4119_v1 = vpop.permute.xlu0 %1653 }
 0x17d   : > { %1839 = vrot.lane.b32.xlu1 %v4098_v61, %s3299_s7 }
 0x17e   : > { %v4117_v43 = vpop.permute.xlu1 %1655 }
 0x17f   : > { %1837 = vrot.lane.b32.xlu0 %v4101_v23, %s3299_s7 }
 0x180   : > { %v4123_v54 = vpop.permute.xlu0 %1657 }
 0x181   : > { %4619 = vst [vmem:[#allocation5_spill] sm:$0xff] %v4123_v54 }
 0x182   : > { %v4121_v44 = vpop.permute.xlu1 %1659 }
 0x184   : > { %v4127_v3 = vpop.permute.xlu0 %1661 }
 0x185   : > { %4621 = vst [vmem:[#allocation7_spill] sm:$0xff] %v4127_v3 }
 0x186   : > { %v4125_v0 = vpop.permute.xlu1 %1663 }
 0x187   : > { %4620 = vst [vmem:[#allocation6_spill] sm:$0xff] %v4125_v0 }
 0x188   : > { %v4131_v2 = vpop.permute.xlu0 %1665 }
 0x189   : > { %4623 = vst [vmem:[#allocation9_spill] sm:$0xff] %v4131_v2 }
 0x18a   : > { %v4129_v18 = vpop.permute.xlu1 %1667 }
 0x18b   : > { %4622 = vst [vmem:[#allocation8_spill] sm:$0xff] %v4129_v18 }
 0x18c   : > { %v4135_v55 = vpop.permute.xlu0 %1669 }
 0x18d   : > { %4624 = vst [vmem:[#allocation10_spill] sm:$0xff] %v4135_v55 }
 0x18e   : > { %v4133_v24 = vpop.permute.xlu1 %1671 }
 0x190   : > { %v4139_v48 = vpop.permute.xlu0 %1673 }
 0x191   : > { %4626 = vst [vmem:[#allocation12_spill] sm:$0xff] %v4139_v48 }
 0x192   : > { %v4137_v5 = vpop.permute.xlu1 %1675 }
 0x193   : > { %4625 = vst [vmem:[#allocation11_spill] sm:$0xff] %v4137_v5 }
 0x194   : > { %v4143_v60 = vpop.permute.xlu0 %1677 }
 0x195   : > { %4628 = vst [vmem:[#allocation14_spill] sm:$0xff] %v4143_v60 }
 0x196   : > { %v4141_v33 = vpop.permute.xlu1 %1679 }
 0x197   : > { %4627 = vst [vmem:[#allocation13_spill] sm:$0xff] %v4141_v33 }
 0x1b1   : > { %v1780_v54 = vpop.permute.xlu1 %1779 }
 0x1b2   : > { %v1874_v0 = vmul.f32 %v1780_v54, %v3830_v25 }
 0x1b3   : > { %v1778_v3 = vpop.permute.xlu0 %1777 }
 0x1b4   : > { %v1873_v18 = vmul.f32 %v1778_v3, %v3834_v57  ;;  %1939 = vrot.lane.b32.xlu1 %v1874_v0, %s3299_s7 }
 0x1b5   : > { %v1784_v2 = vpop.permute.xlu1 %1783 }
 0x1b6   : > { %1937 = vrot.lane.b32.xlu0 %v1873_v18, %s3299_s7  ;;  %v1876_v55 = vmul.f32 %v1784_v2, %v3848_v20 }
 0x1b7   : > { %v1782_v5 = vpop.permute.xlu0 %1781 }
 0x1b8   : > { %v1875_v48 = vmul.f32 %v1782_v5, %v3851_v31  ;;  %1943 = vrot.lane.b32.xlu1 %v1876_v55, %s3299_s7 }
 0x1ba   : > { %1941 = vrot.lane.b32.xlu0 %v1875_v48, %s3299_s7 }
 0x1bb   : > { %v1788_v60 = vpop.permute.xlu1 %1787  ;;  %v1786_v33 = vpop.permute.xlu0 %1785 }
 0x1bc   : > { %v1878_v54 = vmul.f32 %v1788_v60, %v3867_v46  ;;  %v1877_v3 = vmul.f32 %v1786_v33, %v3872_v17 }
 0x1be   : > { %1947 = vrot.lane.b32.xlu1 %v1878_v54, %s3299_s7  ;;  %1945 = vrot.lane.b32.xlu0 %v1877_v3, %s3299_s7 }
 0x1bf   : > { %v1792_v0 = vpop.permute.xlu1 %1791  ;;  %v1790_v2 = vpop.permute.xlu0 %1789 }
 0x1c0   : > { %v1880_v18 = vmul.f32 %v1792_v0, %v3883_v36  ;;  %v1879_v55 = vmul.f32 %v1790_v2, %v3896_v40 }
 0x1c2   : > { %1951 = vrot.lane.b32.xlu1 %v1880_v18, %s3299_s7  ;;  %1949 = vrot.lane.b32.xlu0 %v1879_v55, %s3299_s7 }
 0x1c3   : > { %v1796_v5 = vpop.permute.xlu1 %1795 }
 0x1c4   : > { %v1882_v48 = vmul.f32 %v1796_v5, %v3899_v42 }
 0x1c5   : > { %v1794_v60 = vpop.permute.xlu0 %1793 }
 0x1c6   : > { %1955 = vrot.lane.b32.xlu1 %v1882_v48, %s3299_s7  ;;  %v1881_v33 = vmul.f32 %v1794_v60, %v3908_v51 }
 0x1c7   : > { %v1800_v54 = vpop.permute.xlu1 %1799 }
 0x1c8   : > { %v1884_v3 = vmul.f32 %v1800_v54, %v3924_v58  ;;  %1953 = vrot.lane.b32.xlu0 %v1881_v33, %s3299_s7 }
 0x1c9   : > { %v1798_v0 = vpop.permute.xlu0 %1797 }
 0x1ca   : > { %v1883_v18 = vmul.f32 %v1798_v0, %v3928_v34  ;;  %1959 = vrot.lane.b32.xlu1 %v1884_v3, %s3299_s7 }
 0x1cb   : > { %v1804_v2 = vpop.permute.xlu1 %1803 }
 0x1cc   : > { %v1886_v5 = vmul.f32 %v1804_v2, %v3937_v50  ;;  %1957 = vrot.lane.b32.xlu0 %v1883_v18, %s3299_s7 }
 0x1cd   : > { %v1802_v55 = vpop.permute.xlu0 %1801 }
 0x1ce   : > { %v1885_v48 = vmul.f32 %v1802_v55, %v3956_v53  ;;  %1963 = vrot.lane.b32.xlu1 %v1886_v5, %s3299_s7 }
 0x1cf   : > { %v1808_v60 = vpop.permute.xlu1 %1807 }
 0x1d0   : > { %v1888_v54 = vmul.f32 %v1808_v60, %v3959_v10  ;;  %1961 = vrot.lane.b32.xlu0 %v1885_v48, %s3299_s7 }
 0x1d1   : > { %v1806_v33 = vpop.permute.xlu0 %1805 }
 0x1d2   : > { %v1887_v0 = vmul.f32 %v1806_v33, %v3968_v28  ;;  %1967 = vrot.lane.b32.xlu1 %v1888_v54, %s3299_s7 }
 0x1d3   : > { %v1812_v3 = vpop.permute.xlu1 %1811 }
 0x1d4   : > { %v1890_v2 = vmul.f32 %v1812_v3, %v3987_v6  ;;  %1965 = vrot.lane.b32.xlu0 %v1887_v0, %s3299_s7 }
 0x1d5   : > { %v1810_v18 = vpop.permute.xlu0 %1809 }
 0x1d6   : > { %v1889_v55 = vmul.f32 %v1810_v18, %v3990_v52  ;;  %1971 = vrot.lane.b32.xlu1 %v1890_v2, %s3299_s7 }
 0x1d7   : > { %v1816_v5 = vpop.permute.xlu1 %1815 }
 0x1d8   : > { %v1892_v60 = vmul.f32 %v1816_v5, %v4001_v47  ;;  %1969 = vrot.lane.b32.xlu0 %v1889_v55, %s3299_s7 }
 0x1d9   : > { %v1814_v48 = vpop.permute.xlu0 %1813 }
 0x1da   : > { %v1891_v33 = vmul.f32 %v1814_v48, %v4018_v7  ;;  %1975 = vrot.lane.b32.xlu1 %v1892_v60, %s3299_s7 }
 0x1db   : > { %v1820_v54 = vpop.permute.xlu1 %1819 }
 0x1dc   : > { %v1894_v3 = vmul.f32 %v1820_v54, %v4021_v4  ;;  %1973 = vrot.lane.b32.xlu0 %v1891_v33, %s3299_s7 }
 0x1dd   : > { %v1818_v0 = vpop.permute.xlu0 %1817 }
 0x1de   : > { %v1893_v18 = vmul.f32 %v1818_v0, %v4030_v9  ;;  %1979 = vrot.lane.b32.xlu1 %v1894_v3, %s3299_s7 }
 0x1df   : > { %v1824_v2 = vpop.permute.xlu1 %1823 }
 0x1e0   : > { %v1896_v5 = vmul.f32 %v1824_v2, %v4037_v35  ;;  %1977 = vrot.lane.b32.xlu0 %v1893_v18, %s3299_s7 }
 0x1e1   : > { %v1822_v55 = vpop.permute.xlu0 %1821 }
 0x1e2   : > { %v1895_v48 = vmul.f32 %v1822_v55, %v4046_v41  ;;  %1983 = vrot.lane.b32.xlu1 %v1896_v5, %s3299_s7 }
 0x1e3   : > { %v1828_v60 = vpop.permute.xlu1 %1827 }
 0x1e4   : > { %v1898_v54 = vmul.f32 %v1828_v60, %v4054_v19  ;;  %1981 = vrot.lane.b32.xlu0 %v1895_v48, %s3299_s7 }
 0x1e5   : > { %v1826_v33 = vpop.permute.xlu0 %1825 }
 0x1e6   : > { %v1897_v0 = vmul.f32 %v1826_v33, %v4060_v49  ;;  %1987 = vrot.lane.b32.xlu1 %v1898_v54, %s3299_s7 }
 0x1e7   : > { %v1832_v3 = vpop.permute.xlu1 %1831 }
 0x1e8   : > { %v1900_v2 = vmul.f32 %v1832_v3, %v4068_v56  ;;  %1985 = vrot.lane.b32.xlu0 %v1897_v0, %s3299_s7 }
 0x1e9   : > { %v1830_v18 = vpop.permute.xlu0 %1829 }
 0x1ea   : > { %v1899_v55 = vmul.f32 %v1830_v18, %v4075_v21  ;;  %1991 = vrot.lane.b32.xlu1 %v1900_v2, %s3299_s7  ;;  %v1714_v2 = vmul.f32 %v3970_v32, %v3830_v25 }
 0x1eb   : > { %v1836_v5 = vpop.permute.xlu1 %1835 }
 0x1ec   : > { %v1902_v60 = vmul.f32 %v1836_v5, %v4082_v30  ;;  %1989 = vrot.lane.b32.xlu0 %v1899_v55, %s3299_s7  ;;  %v1713_v55 = vmul.f32 %v3939_v27, %v3834_v57 }
 0x1ed   : > { %v1834_v48 = vpop.permute.xlu0 %1833 }
 0x1ee   : > { %v1901_v33 = vmul.f32 %v1834_v48, %v4090_v39  ;;  %1995 = vrot.lane.b32.xlu1 %v1902_v60, %s3299_s7 }
 0x1ef   : > { %v1840_v54 = vpop.permute.xlu1 %1839 }
 0x1f0   : > { %v1904_v3 = vmul.f32 %v1840_v54, %v4098_v61  ;;  %1993 = vrot.lane.b32.xlu0 %v1901_v33, %s3299_s7  ;;  %v1716_v33 = vmul.f32 %v3948_v45, %v3848_v20  ;;  %v1717_v45 = vmul.f32 %v3993_v12, %v3872_v17 }
 0x1f1   : > { %v1838_v0 = vpop.permute.xlu0 %1837 }
 0x1f2   : > { %v1903_v18 = vmul.f32 %v1838_v0, %v4101_v23  ;;  %1999 = vrot.lane.b32.xlu1 %v1904_v3, %s3299_s7  ;;  %v1715_v3 = vmul.f32 %v3917_v26, %v3851_v31 }
 0x1f4   : > { %1997 = vrot.lane.b32.xlu0 %v1903_v18, %s3299_s7 }
 0x226   : > { %v1940_v5 = vpop.permute.xlu1 %1939 }
 0x227   : > { %v4213_v60 = vadd.f32 %v1940_v5, %v1714_v2  ;;  %v1718_v2 = vmul.f32 %v3979_v16, %v3867_v46 }
 0x228   : > { %v1938_v48 = vpop.permute.xlu0 %1937 }
 0x229   : > { %v4215_v54 = vadd.f32 %v1938_v48, %v1713_v55  ;;  %3194 = vtanh.f32 %v4213_v60 }
 0x22a   : > { %v1944_v32 = vpop.permute.xlu1 %1943 }
 0x22b   : > { %3196 = vtanh.f32 %v4215_v54  ;;  %v4223_v0 = vadd.f32 %v1944_v32, %v1716_v33  ;;  %v1720_v33 = vmul.f32 %v4013_v13, %v3883_v36  ;;  %v1719_v32 = vmul.f32 %v4023_v59, %v3896_v40 }
 0x22c   : > { %v1942_v27 = vpop.permute.xlu0 %1941  ;;  %v1721_v59 = vmul.f32 %v4048_v8, %v3908_v51  ;;  %v1723_v8 = vmul.f32 %v4070_v11, %v3928_v34  ;;  %v1725_v11 = vmul.f32 %v4092_v14, %v3956_v53  ;;  %v1727_v14 = vmul.f32 %v4109_v63, %v3968_v28 }
 0x22d   : > { %v4225_v18 = vadd.f32 %v1942_v27, %v1715_v3  ;;  %3198 = vtanh.f32 %v4223_v0  ;;  %v1722_v27 = vmul.f32 %v4041_v62, %v3899_v42  ;;  %v1729_v63 = vmul.f32 %v4115_v37, %v3990_v52 }
 0x22e   : > { %v1731_v37 = vmul.f32 %v4119_v1, %v4018_v7  ;;  %v4632_v1 = vld [vmem:[#allocation5_spill] sm:$0xff] }
 0x22f   : > { %3200 = vtanh.f32 %v4225_v18 }
 0x230   : > { %v1948_v55 = vpop.permute.xlu1 %1947  ;;  %v1946_v5 = vpop.permute.xlu0 %1945 }
 0x231   : > { %v4233_v26 = vadd.f32 %v1948_v55, %v1718_v2  ;;  %v4235_v48 = vadd.f32 %v1946_v5, %v1717_v45 }
 0x233   : > { %3202 = vtanh.f32 %v4233_v26 }
 0x234   : > { %3204 = vtanh.f32 %v4235_v48  ;;  %v1952_v3 = vpop.permute.xlu1 %1951  ;;  %v1950_v2 = vpop.permute.xlu0 %1949 }
 0x235   : > { %v4241_v16 = vadd.f32 %v1952_v3, %v1720_v33  ;;  %v4248_v55 = vadd.f32 %v1950_v2, %v1719_v32  ;;  %v1724_v32 = vmul.f32 %v4063_v15, %v3924_v58 }
 0x236   : > { %v3195_v12 = vpop.eup %3194 }
 0x237   : > { %3206 = vtanh.f32 %v4241_v16  ;;  %2131 = vrot.lane.b32.xlu1 %v3195_v12, %s3299_s7 }
 0x238   : > { %v3197_v45 = vpop.eup %3196  ;;  %v1956_v13 = vpop.permute.xlu1 %1955  ;;  %3208 = vtanh.f32 %v4248_v55 }
 0x239   : > { %v4251_v5 = vadd.f32 %v1956_v13, %v1722_v27  ;;  %2129 = vrot.lane.b32.xlu0 %v3197_v45, %s3299_s7 }
 0x23a   : > { %v3199_v33 = vpop.eup %3198  ;;  %v1954_v62 = vpop.permute.xlu0 %1953 }
 0x23b   : > { %4629 = vst [vmem:[#allocation15_spill] sm:$0xff] %v4251_v5  ;;  %3210 = vtanh.f32 %v4251_v5  ;;  %v4260_v2 = vadd.f32 %v1954_v62, %v1721_v59  ;;  %2135 = vrot.lane.b32.xlu1 %v3199_v33, %s3299_s7  ;;  %v1726_v5 = vmul.f32 %v4085_v38, %v3937_v50  ;;  %v1728_v38 = vmul.f32 %v4105_v22, %v3959_v10 }
 0x23c   : > { %v3201_v3 = vpop.eup %3200  ;;  %v1960_v12 = vpop.permute.xlu1 %1959  ;;  %v1730_v22 = vmul.f32 %v4113_v29, %v3987_v6  ;;  %v1732_v29 = vmul.f32 %v4117_v43, %v4001_v47  ;;  %v1734_v43 = vmul.f32 %v4121_v44, %v4021_v4  ;;  %v4634_v44 = vld [vmem:[#allocation6_spill] sm:$0xff] }
 0x23d   : > { %2133 = vrot.lane.b32.xlu0 %v3201_v3, %s3299_s7  ;;  %3212 = vtanh.f32 %v4260_v2  ;;  %v4267_v27 = vadd.f32 %v1960_v12, %v1724_v32 }
 0x23e   : > { %v1958_v45 = vpop.permute.xlu0 %1957 }
 0x23f   : > { %3214 = vtanh.f32 %v4267_v27  ;;  %v4272_v15 = vadd.f32 %v1958_v45, %v1723_v8 }
 0x240   : > { %v3203_v13 = vpop.eup %3202  ;;  %v1964_v33 = vpop.permute.xlu1 %1963 }
 0x241   : > { %v3205_v59 = vpop.eup %3204  ;;  %2139 = vrot.lane.b32.xlu1 %v3203_v13, %s3299_s7  ;;  %3216 = vtanh.f32 %v4272_v15  ;;  %v4278_v62 = vadd.f32 %v1964_v33, %v1726_v5 }
 0x242   : > { %2137 = vrot.lane.b32.xlu0 %v3205_v59, %s3299_s7  ;;  %v1962_v3 = vpop.permute.xlu0 %1961 }
 0x243   : > { %3218 = vtanh.f32 %v4278_v62  ;;  %v4284_v12 = vadd.f32 %v1962_v3, %v1725_v11 }
 0x244   : > { %v3207_v32 = vpop.eup %3206  ;;  %v1968_v8 = vpop.permute.xlu1 %1967 }
 0x245   : > { %2143 = vrot.lane.b32.xlu1 %v3207_v32, %s3299_s7  ;;  %3220 = vtanh.f32 %v4284_v12  ;;  %v4290_v5 = vadd.f32 %v1968_v8, %v1728_v38  ;;  %v3209_v45 = vpop.eup %3208 }
 0x246   : > { %v1966_v13 = vpop.permute.xlu0 %1965  ;;  %2141 = vrot.lane.b32.xlu0 %v3209_v45, %s3299_s7 }
 0x247   : > { %3222 = vtanh.f32 %v4290_v5  ;;  %v4295_v33 = vadd.f32 %v1966_v13, %v1727_v14 }
 0x248   : > { %v3211_v59 = vpop.eup %3210  ;;  %v1972_v11 = vpop.permute.xlu1 %1971 }
 0x249   : > { %2147 = vrot.lane.b32.xlu1 %v3211_v59, %s3299_s7  ;;  %3224 = vtanh.f32 %v4295_v33  ;;  %v4302_v3 = vadd.f32 %v1972_v11, %v1730_v22 }
 0x24a   : > { %v3213_v32 = vpop.eup %3212  ;;  %v1970_v38 = vpop.permute.xlu0 %1969 }
 0x24b   : > { %3226 = vtanh.f32 %v4302_v3  ;;  %v4307_v8 = vadd.f32 %v1970_v38, %v1729_v63  ;;  %2145 = vrot.lane.b32.xlu0 %v3213_v32, %s3299_s7  ;;  %v1733_v38 = vmul.f32 %v4632_v1, %v4030_v9  ;;  %v4636_v1 = vld [vmem:[#allocation7_spill] sm:$0xff] }
 0x24c   : > { %v3215_v14 = vpop.eup %3214  ;;  %v1976_v45 = vpop.permute.xlu1 %1975 }
 0x24d   : > { %3228 = vtanh.f32 %v4307_v8  ;;  %v4313_v13 = vadd.f32 %v1976_v45, %v1732_v29  ;;  %2151 = vrot.lane.b32.xlu1 %v3215_v14, %s3299_s7 }
 0x24e   : > { %v3217_v59 = vpop.eup %3216  ;;  %v1974_v22 = vpop.permute.xlu0 %1973 }
 0x24f   : > { %4630 = vst [vmem:[#allocation16_spill] sm:$0xff] %v4313_v13  ;;  %3230 = vtanh.f32 %v4313_v13  ;;  %v4319_v11 = vadd.f32 %v1974_v22, %v1731_v37  ;;  %2149 = vrot.lane.b32.xlu0 %v3217_v59, %s3299_s7  ;;  %v1736_v13 = vmul.f32 %v4634_v44, %v4037_v35  ;;  %v4637_v44 = vld [vmem:[#allocation8_spill] sm:$0xff] }
 0x250   : > { %v3219_v63 = vpop.eup %3218  ;;  %v1980_v32 = vpop.permute.xlu1 %1979 }
 0x251   : > { %4631 = vst [vmem:[#allocation17_spill] sm:$0xff] %v4319_v11  ;;  %3232 = vtanh.f32 %v4319_v11  ;;  %v4325_v29 = vadd.f32 %v1980_v32, %v1734_v43  ;;  %2155 = vrot.lane.b32.xlu1 %v3219_v63, %s3299_s7  ;;  %v1735_v11 = vmul.f32 %v4636_v1, %v4046_v41  ;;  %v4639_v1 = vld [vmem:[#allocation9_spill] sm:$0xff] }
 0x252   : > { %v3221_v14 = vpop.eup %3220  ;;  %v1978_v45 = vpop.permute.xlu0 %1977 }
 0x253   : > { %4633 = vst [vmem:[#allocation5_spill] sm:$0xff] %v4325_v29  ;;  %3234 = vtanh.f32 %v4325_v29  ;;  %v4331_v37 = vadd.f32 %v1978_v45, %v1733_v38  ;;  %2153 = vrot.lane.b32.xlu0 %v3221_v14, %s3299_s7  ;;  %v1738_v29 = vmul.f32 %v4637_v44, %v4054_v19  ;;  %v1740_v44 = vmul.f32 %v4133_v24, %v4068_v56  ;;  %v4644_v24 = vld [vmem:[#allocation11_spill] sm:$0xff] }
 0x254   : > { %v3223_v59 = vpop.eup %3222  ;;  %v1984_v22 = vpop.permute.xlu1 %1983 }
 0x255   : > { %4635 = vst [vmem:[#allocation6_spill] sm:$0xff] %v4331_v37  ;;  %3236 = vtanh.f32 %v4331_v37  ;;  %v4337_v43 = vadd.f32 %v1984_v22, %v1736_v13  ;;  %2159 = vrot.lane.b32.xlu1 %v3223_v59, %s3299_s7  ;;  %v1737_v37 = vmul.f32 %v4639_v1, %v4060_v49  ;;  %v4642_v1 = vld [vmem:[#allocation10_spill] sm:$0xff] }
 0x256   : > { %v3225_v63 = vpop.eup %3224  ;;  %v1982_v32 = vpop.permute.xlu0 %1981 }
 0x257   : > { %3238 = vtanh.f32 %v4337_v43  ;;  %v4343_v38 = vadd.f32 %v1982_v32, %v1735_v11  ;;  %2157 = vrot.lane.b32.xlu0 %v3225_v63, %s3299_s7 }
 0x258   : > { %v3227_v14 = vpop.eup %3226  ;;  %v1988_v45 = vpop.permute.xlu1 %1987 }
 0x259   : > { %4638 = vst [vmem:[#allocation7_spill] sm:$0xff] %v4343_v38  ;;  %3240 = vtanh.f32 %v4343_v38  ;;  %v4349_v13 = vadd.f32 %v1988_v45, %v1738_v29  ;;  %2163 = vrot.lane.b32.xlu1 %v3227_v14, %s3299_s7  ;;  %v1739_v38 = vmul.f32 %v4642_v1, %v4075_v21  ;;  %v4646_v1 = vld [vmem:[#allocation12_spill] sm:$0xff] }
 0x25a   : > { %v3229_v59 = vpop.eup %3228  ;;  %v1986_v22 = vpop.permute.xlu0 %1985 }
 0x25b   : > { %4640 = vst [vmem:[#allocation8_spill] sm:$0xff] %v4349_v13  ;;  %3242 = vtanh.f32 %v4349_v13  ;;  %v4355_v11 = vadd.f32 %v1986_v22, %v1737_v37  ;;  %2161 = vrot.lane.b32.xlu0 %v3229_v59, %s3299_s7  ;;  %v1742_v13 = vmul.f32 %v4644_v24, %v4082_v30  ;;  %v4647_v24 = vld [vmem:[#allocation13_spill] sm:$0xff] }
 0x25c   : > { %v3231_v63 = vpop.eup %3230  ;;  %v1992_v32 = vpop.permute.xlu1 %1991 }
 0x25d   : > { %4641 = vst [vmem:[#allocation9_spill] sm:$0xff] %v4355_v11  ;;  %3244 = vtanh.f32 %v4355_v11  ;;  %v4361_v29 = vadd.f32 %v1992_v32, %v1740_v44  ;;  %2167 = vrot.lane.b32.xlu1 %v3231_v63, %s3299_s7  ;;  %v1741_v11 = vmul.f32 %v4646_v1, %v4090_v39  ;;  %v4648_v1 = vld [vmem:[#allocation14_spill] sm:$0xff] }
 0x25e   : > { %v3233_v14 = vpop.eup %3232  ;;  %v1990_v45 = vpop.permute.xlu0 %1989 }
 0x25f   : > { %4643 = vst [vmem:[#allocation10_spill] sm:$0xff] %v4361_v29  ;;  %3246 = vtanh.f32 %v4361_v29  ;;  %v4367_v37 = vadd.f32 %v1990_v45, %v1739_v38  ;;  %2165 = vrot.lane.b32.xlu0 %v3233_v14, %s3299_s7  ;;  %v1744_v29 = vmul.f32 %v4647_v24, %v4098_v61 }
 0x260   : > { %v3235_v59 = vpop.eup %3234  ;;  %v1996_v22 = vpop.permute.xlu1 %1995 }
 0x261   : > { %4645 = vst [vmem:[#allocation11_spill] sm:$0xff] %v4367_v37  ;;  %3248 = vtanh.f32 %v4367_v37  ;;  %v4373_v44 = vadd.f32 %v1996_v22, %v1742_v13  ;;  %2171 = vrot.lane.b32.xlu1 %v3235_v59, %s3299_s7  ;;  %v1743_v37 = vmul.f32 %v4648_v1, %v4101_v23 }
 0x262   : > { %v3237_v63 = vpop.eup %3236  ;;  %v1994_v32 = vpop.permute.xlu0 %1993 }
 0x263   : > { %3250 = vtanh.f32 %v4373_v44  ;;  %v4379_v38 = vadd.f32 %v1994_v32, %v1741_v11  ;;  %2169 = vrot.lane.b32.xlu0 %v3237_v63, %s3299_s7 }
 0x264   : > { %v3239_v14 = vpop.eup %3238  ;;  %v2000_v45 = vpop.permute.xlu1 %1999 }
 0x265   : > { %3252 = vtanh.f32 %v4379_v38  ;;  %v4385_v13 = vadd.f32 %v2000_v45, %v1744_v29  ;;  %2175 = vrot.lane.b32.xlu1 %v3239_v14, %s3299_s7 }
 0x266   : > { %v3241_v59 = vpop.eup %3240  ;;  %v1998_v22 = vpop.permute.xlu0 %1997 }
 0x267   : > { %3254 = vtanh.f32 %v4385_v13  ;;  %v4389_v24 = vadd.f32 %v1998_v22, %v1743_v37  ;;  %2173 = vrot.lane.b32.xlu0 %v3241_v59, %s3299_s7 }
 0x268   : > { %v3243_v11 = vpop.eup %3242 }
 0x269   : > { %3256 = vtanh.f32 %v4389_v24  ;;  %2179 = vrot.lane.b32.xlu1 %v3243_v11, %s3299_s7 }
 0x26a   : > { %v3245_v63 = vpop.eup %3244 }
 0x26b   : > { %2177 = vrot.lane.b32.xlu0 %v3245_v63, %s3299_s7 }
 0x26c   : > { %v3247_v29 = vpop.eup %3246 }
 0x26d   : > { %2183 = vrot.lane.b32.xlu1 %v3247_v29, %s3299_s7 }
 0x26e   : > { %v3249_v32 = vpop.eup %3248 }
 0x26f   : > { %2181 = vrot.lane.b32.xlu0 %v3249_v32, %s3299_s7 }
 0x270   : > { %v3251_v14 = vpop.eup %3250 }
 0x271   : > { %2187 = vrot.lane.b32.xlu1 %v3251_v14, %s3299_s7 }
 0x272   : > { %v3253_v37 = vpop.eup %3252 }
 0x273   : > { %2185 = vrot.lane.b32.xlu0 %v3253_v37, %s3299_s7 }
 0x274   : > { %v3255_v45 = vpop.eup %3254 }
 0x275   : > { %2191 = vrot.lane.b32.xlu1 %v3255_v45, %s3299_s7 }
 0x276   : > { %v3257_v1 = vpop.eup %3256 }
 0x277   : > { %2189 = vrot.lane.b32.xlu0 %v3257_v1, %s3299_s7 }
 0x2a9   : > { %v2132_v59 = vpop.permute.xlu1 %2131 }
 0x2aa   : > { %v2226_v22 = vmul.f32 %v2132_v59, %v3830_v25 }
 0x2ab   : > { %v2130_v11 = vpop.permute.xlu0 %2129 }
 0x2ac   : > { %v2225_v63 = vmul.f32 %v2130_v11, %v3834_v57  ;;  %2291 = vrot.lane.b32.xlu1 %v2226_v22, %s3302_s10 }
 0x2ad   : > { %v2136_v29 = vpop.permute.xlu1 %2135 }
 0x2ae   : > { %2289 = vrot.lane.b32.xlu0 %v2225_v63, %s3302_s10  ;;  %v2228_v32 = vmul.f32 %v2136_v29, %v3848_v20 }
 0x2af   : > { %v2134_v14 = vpop.permute.xlu0 %2133 }
 0x2b0   : > { %v2227_v37 = vmul.f32 %v2134_v14, %v3851_v31  ;;  %2295 = vrot.lane.b32.xlu1 %v2228_v32, %s3302_s10 }
 0x2b2   : > { %2293 = vrot.lane.b32.xlu0 %v2227_v37, %s3302_s10 }
 0x2b3   : > { %v2140_v45 = vpop.permute.xlu1 %2139 }
 0x2b4   : > { %v2230_v25 = vmul.f32 %v2140_v45, %v3867_v46  ;;  %v2138_v1 = vpop.permute.xlu0 %2137 }
 0x2b5   : > { %v2229_v57 = vmul.f32 %v2138_v1, %v3872_v17 }
 0x2b6   : > { %2299 = vrot.lane.b32.xlu1 %v2230_v25, %s3302_s10 }
 0x2b7   : > { %v2144_v59 = vpop.permute.xlu1 %2143  ;;  %2297 = vrot.lane.b32.xlu0 %v2229_v57, %s3302_s10 }
 0x2b8   : > { %v2232_v20 = vmul.f32 %v2144_v59, %v3883_v36  ;;  %v2142_v22 = vpop.permute.xlu0 %2141 }
 0x2b9   : > { %v2231_v31 = vmul.f32 %v2142_v22, %v3896_v40 }
 0x2ba   : > { %2303 = vrot.lane.b32.xlu1 %v2232_v20, %s3302_s10 }
 0x2bb   : > { %v2148_v11 = vpop.permute.xlu1 %2147  ;;  %2301 = vrot.lane.b32.xlu0 %v2231_v31, %s3302_s10 }
 0x2bc   : > { %v2234_v63 = vmul.f32 %v2148_v11, %v3899_v42 }
 0x2bd   : > { %v2146_v46 = vpop.permute.xlu0 %2145 }
 0x2be   : > { %2307 = vrot.lane.b32.xlu1 %v2234_v63, %s3302_s10  ;;  %v2233_v17 = vmul.f32 %v2146_v46, %v3908_v51 }
 0x2bf   : > { %v2152_v29 = vpop.permute.xlu1 %2151 }
 0x2c0   : > { %v2236_v32 = vmul.f32 %v2152_v29, %v3924_v58  ;;  %2305 = vrot.lane.b32.xlu0 %v2233_v17, %s3302_s10 }
 0x2c1   : > { %v2150_v36 = vpop.permute.xlu0 %2149 }
 0x2c2   : > { %v2235_v14 = vmul.f32 %v2150_v36, %v3928_v34  ;;  %2311 = vrot.lane.b32.xlu1 %v2236_v32, %s3302_s10 }
 0x2c3   : > { %v2156_v40 = vpop.permute.xlu1 %2155 }
 0x2c4   : > { %v2238_v42 = vmul.f32 %v2156_v40, %v3937_v50  ;;  %2309 = vrot.lane.b32.xlu0 %v2235_v14, %s3302_s10 }
 0x2c5   : > { %v2154_v37 = vpop.permute.xlu0 %2153 }
 0x2c6   : > { %v2237_v45 = vmul.f32 %v2154_v37, %v3956_v53  ;;  %2315 = vrot.lane.b32.xlu1 %v2238_v42, %s3302_s10 }
 0x2c7   : > { %v2160_v51 = vpop.permute.xlu1 %2159 }
 0x2c8   : > { %v2240_v58 = vmul.f32 %v2160_v51, %v3959_v10  ;;  %2313 = vrot.lane.b32.xlu0 %v2237_v45, %s3302_s10 }
 0x2c9   : > { %v2158_v25 = vpop.permute.xlu0 %2157 }
 0x2ca   : > { %v2239_v34 = vmul.f32 %v2158_v25, %v3968_v28  ;;  %2319 = vrot.lane.b32.xlu1 %v2240_v58, %s3302_s10 }
 0x2cb   : > { %v2164_v1 = vpop.permute.xlu1 %2163 }
 0x2cc   : > { %v2242_v50 = vmul.f32 %v2164_v1, %v3987_v6  ;;  %2317 = vrot.lane.b32.xlu0 %v2239_v34, %s3302_s10 }
 0x2cd   : > { %v2162_v57 = vpop.permute.xlu0 %2161 }
 0x2ce   : > { %v2241_v53 = vmul.f32 %v2162_v57, %v3990_v52  ;;  %2323 = vrot.lane.b32.xlu1 %v2242_v50, %s3302_s10  ;;  %v4649_v57 = vld [vmem:[#allocation15_spill] sm:$0xff] }
 0x2cf   : > { %v2168_v59 = vpop.permute.xlu1 %2167 }
 0x2d0   : > { %v2244_v10 = vmul.f32 %v2168_v59, %v4001_v47  ;;  %2321 = vrot.lane.b32.xlu0 %v2241_v53, %s3302_s10 }
 0x2d1   : > { %v2166_v20 = vpop.permute.xlu0 %2165 }
 0x2d2   : > { %v2243_v28 = vmul.f32 %v2166_v20, %v4018_v7  ;;  %2327 = vrot.lane.b32.xlu1 %v2244_v10, %s3302_s10 }
 0x2d3   : > { %v2172_v22 = vpop.permute.xlu1 %2171 }
 0x2d4   : > { %v2246_v6 = vmul.f32 %v2172_v22, %v4021_v4  ;;  %2325 = vrot.lane.b32.xlu0 %v2243_v28, %s3302_s10 }
 0x2d5   : > { %v2170_v31 = vpop.permute.xlu0 %2169 }
 0x2d6   : > { %v2245_v52 = vmul.f32 %v2170_v31, %v4030_v9  ;;  %2331 = vrot.lane.b32.xlu1 %v2246_v6, %s3302_s10 }
 0x2d7   : > { %v2176_v11 = vpop.permute.xlu1 %2175 }
 0x2d8   : > { %v2248_v47 = vmul.f32 %v2176_v11, %v4037_v35  ;;  %2329 = vrot.lane.b32.xlu0 %v2245_v52, %s3302_s10 }
 0x2d9   : > { %v2174_v63 = vpop.permute.xlu0 %2173 }
 0x2da   : > { %v2247_v7 = vmul.f32 %v2174_v63, %v4046_v41  ;;  %2335 = vrot.lane.b32.xlu1 %v2248_v47, %s3302_s10  ;;  %v4650_v63 = vld [vmem:[#allocation16_spill] sm:$0xff] }
 0x2db   : > { %v2180_v46 = vpop.permute.xlu1 %2179 }
 0x2dc   : > { %v2250_v4 = vmul.f32 %v2180_v46, %v4054_v19  ;;  %2333 = vrot.lane.b32.xlu0 %v2247_v7, %s3302_s10  ;;  %v4651_v46 = vld [vmem:[#allocation17_spill] sm:$0xff] }
 0x2dd   : > { %v2178_v17 = vpop.permute.xlu0 %2177 }
 0x2de   : > { %v2249_v9 = vmul.f32 %v2178_v17, %v4060_v49  ;;  %2339 = vrot.lane.b32.xlu1 %v2250_v4, %s3302_s10  ;;  %v4652_v17 = vld [vmem:[#allocation5_spill] sm:$0xff] }
 0x2df   : > { %v2184_v29 = vpop.permute.xlu1 %2183 }
 0x2e0   : > { %v2252_v35 = vmul.f32 %v2184_v29, %v4068_v56  ;;  %2337 = vrot.lane.b32.xlu0 %v2249_v9, %s3302_s10  ;;  %v4653_v29 = vld [vmem:[#allocation6_spill] sm:$0xff] }
 0x2e1   : > { %v2182_v32 = vpop.permute.xlu0 %2181 }
 0x2e2   : > { %v2251_v41 = vmul.f32 %v2182_v32, %v4075_v21  ;;  %2343 = vrot.lane.b32.xlu1 %v2252_v35, %s3302_s10 }
 0x2e3   : > { %v2188_v36 = vpop.permute.xlu1 %2187 }
 0x2e4   : > { %v2254_v19 = vmul.f32 %v2188_v36, %v4082_v30  ;;  %2341 = vrot.lane.b32.xlu0 %v2251_v41, %s3302_s10 }
 0x2e5   : > { %v2186_v14 = vpop.permute.xlu0 %2185 }
 0x2e6   : > { %v2253_v49 = vmul.f32 %v2186_v14, %v4090_v39  ;;  %2347 = vrot.lane.b32.xlu1 %v2254_v19, %s3302_s10  ;;  %v4654_v19 = vld [vmem:[#allocation7_spill] sm:$0xff] }
 0x2e7   : > { %v2192_v40 = vpop.permute.xlu1 %2191 }
 0x2e8   : > { %v2256_v56 = vmul.f32 %v2192_v40, %v4098_v61  ;;  %2345 = vrot.lane.b32.xlu0 %v2253_v49, %s3302_s10  ;;  %v4655_v40 = vld [vmem:[#allocation8_spill] sm:$0xff] }
 0x2e9   : > { %v2190_v42 = vpop.permute.xlu0 %2189 }
 0x2ea   : > { %v2255_v21 = vmul.f32 %v2190_v42, %v4101_v23  ;;  %2351 = vrot.lane.b32.xlu1 %v2256_v56, %s3302_s10 }
 0x2ec   : > { %2349 = vrot.lane.b32.xlu0 %v2255_v21, %s3302_s10  ;;  %v4656_v21 = vld [vmem:[#allocation9_spill] sm:$0xff] }
 0x31e   : > { %v2292_v30 = vpop.permute.xlu1 %2291 }
 0x31f   : > { %v2387_v39 = vsel %vm2385_vm3, %v2292_v30, %v4213_v60 }
 0x320   : > { %v2290_v61 = vpop.permute.xlu0 %2289  ;;  %2420 = vst.msk [vmem:[%s4470_s13 + $0x8] sm:$0xff] %vm2418_vm4, %v2387_v39  ;;  %v4657_v39 = vld [vmem:[#allocation10_spill] sm:$0xff] }
 0x321   : > { %v2386_v23 = vsel %vm2385_vm3, %v2290_v61, %v4215_v54 }
 0x322   : > { %2419 = vst.msk [vmem:[%s4470_s13] sm:$0xff] %vm2418_vm4, %v2386_v23  ;;  %v2296_v37 = vpop.permute.xlu1 %2295 }
 0x323   : > { %v2389_v45 = vsel %vm2385_vm3, %v2296_v37, %v4223_v0  ;;  %v4658_v37 = vld [vmem:[#allocation11_spill] sm:$0xff] }
 0x324   : > { %v2294_v51 = vpop.permute.xlu0 %2293  ;;  %2422 = vst.msk [vmem:[%s4470_s13 + $0x18] sm:$0xff] %vm2418_vm4, %v2389_v45 }
 0x325   : > { %v2388_v60 = vsel %vm2385_vm3, %v2294_v51, %v4225_v18 }
 0x326   : > { %2421 = vst.msk [vmem:[%s4470_s13 + $0x10] sm:$0xff] %vm2418_vm4, %v2388_v60 }
 0x328   : > { %v2300_v58 = vpop.permute.xlu1 %2299 }
 0x329   : > { %v2391_v54 = vsel %vm2385_vm3, %v2300_v58, %v4233_v26  ;;  %v2298_v25 = vpop.permute.xlu0 %2297 }
 0x32a   : > { %2424 = vst.msk [vmem:[%s4470_s13 + $0x28] sm:$0xff] %vm2418_vm4, %v2391_v54  ;;  %v2390_v0 = vsel %vm2385_vm3, %v2298_v25, %v4235_v48 }
 0x32b   : > { %2423 = vst.msk [vmem:[%s4470_s13 + $0x20] sm:$0xff] %vm2418_vm4, %v2390_v0 }
 0x32c   : > { %v2304_v34 = vpop.permute.xlu1 %2303 }
 0x32d   : > { %v2393_v18 = vsel %vm2385_vm3, %v2304_v34, %v4241_v16  ;;  %v2302_v1 = vpop.permute.xlu0 %2301 }
 0x32e   : > { %2426 = vst.msk [vmem:[%s4470_s13 + $0x38] sm:$0xff] %vm2418_vm4, %v2393_v18  ;;  %v2392_v26 = vsel %vm2385_vm3, %v2302_v1, %v4248_v55 }
 0x32f   : > { %2425 = vst.msk [vmem:[%s4470_s13 + $0x30] sm:$0xff] %vm2418_vm4, %v2392_v26 }
 0x330   : > { %v2308_v50 = vpop.permute.xlu1 %2307 }
 0x331   : > { %v2395_v48 = vsel %vm2385_vm3, %v2308_v50, %v4649_v57 }
 0x332   : > { %2428 = vst.msk [vmem:[%s4470_s13 + $0x48] sm:$0xff] %vm2418_vm4, %v2395_v48  ;;  %v2306_v53 = vpop.permute.xlu0 %2305 }
 0x333   : > { %v2394_v16 = vsel %vm2385_vm3, %v2306_v53, %v4260_v2 }
 0x334   : > { %2427 = vst.msk [vmem:[%s4470_s13 + $0x40] sm:$0xff] %vm2418_vm4, %v2394_v16  ;;  %v2312_v59 = vpop.permute.xlu1 %2311 }
 0x335   : > { %v2397_v55 = vsel %vm2385_vm3, %v2312_v59, %v4267_v27 }
 0x336   : > { %2430 = vst.msk [vmem:[%s4470_s13 + $0x58] sm:$0xff] %vm2418_vm4, %v2397_v55  ;;  %v2310_v10 = vpop.permute.xlu0 %2309 }
 0x337   : > { %v2396_v20 = vsel %vm2385_vm3, %v2310_v10, %v4272_v15 }
 0x338   : > { %2429 = vst.msk [vmem:[%s4470_s13 + $0x50] sm:$0xff] %vm2418_vm4, %v2396_v20  ;;  %v2316_v28 = vpop.permute.xlu1 %2315 }
 0x339   : > { %v2399_v2 = vsel %vm2385_vm3, %v2316_v28, %v4278_v62 }
 0x33a   : > { %2432 = vst.msk [vmem:[%s4470_s13 + $0x68] sm:$0xff] %vm2418_vm4, %v2399_v2  ;;  %v2314_v22 = vpop.permute.xlu0 %2313 }
 0x33b   : > { %v2398_v27 = vsel %vm2385_vm3, %v2314_v22, %v4284_v12 }
 0x33c   : > { %2431 = vst.msk [vmem:[%s4470_s13 + $0x60] sm:$0xff] %vm2418_vm4, %v2398_v27  ;;  %v2320_v6 = vpop.permute.xlu1 %2319 }
 0x33d   : > { %v2401_v15 = vsel %vm2385_vm3, %v2320_v6, %v4290_v5 }
 0x33e   : > { %2434 = vst.msk [vmem:[%s4470_s13 + $0x78] sm:$0xff] %vm2418_vm4, %v2401_v15  ;;  %v2318_v31 = vpop.permute.xlu0 %2317 }
 0x33f   : > { %v2400_v62 = vsel %vm2385_vm3, %v2318_v31, %v4295_v33 }
 0x340   : > { %2433 = vst.msk [vmem:[%s4470_s13 + $0x70] sm:$0xff] %vm2418_vm4, %v2400_v62  ;;  %v2324_v52 = vpop.permute.xlu1 %2323 }
 0x341   : > { %v2403_v12 = vsel %vm2385_vm3, %v2324_v52, %v4302_v3 }
 0x342   : > { %2436 = vst.msk [vmem:[%s4470_s13 + $0x88] sm:$0xff] %vm2418_vm4, %v2403_v12  ;;  %v2322_v11 = vpop.permute.xlu0 %2321 }
 0x343   : > { %v2402_v5 = vsel %vm2385_vm3, %v2322_v11, %v4307_v8 }
 0x344   : > { %2435 = vst.msk [vmem:[%s4470_s13 + $0x80] sm:$0xff] %vm2418_vm4, %v2402_v5  ;;  %v2328_v47 = vpop.permute.xlu1 %2327 }
 0x345   : > { %v2405_v33 = vsel %vm2385_vm3, %v2328_v47, %v4650_v63 }
 0x346   : > { %2438 = vst.msk [vmem:[%s4470_s13 + $0x98] sm:$0xff] %vm2418_vm4, %v2405_v33  ;;  %v2326_v7 = vpop.permute.xlu0 %2325 }
 0x347   : > { %v2404_v3 = vsel %vm2385_vm3, %v2326_v7, %v4651_v46 }
 0x348   : > { %2437 = vst.msk [vmem:[%s4470_s13 + $0x90] sm:$0xff] %vm2418_vm4, %v2404_v3  ;;  %v2332_v4 = vpop.permute.xlu1 %2331 }
 0x349   : > { %v2407_v8 = vsel %vm2385_vm3, %v2332_v4, %v4652_v17 }
 0x34a   : > { %2440 = vst.msk [vmem:[%s4470_s13 + $0xa8] sm:$0xff] %vm2418_vm4, %v2407_v8  ;;  %v2330_v9 = vpop.permute.xlu0 %2329 }
 0x34b   : > { %v2406_v35 = vsel %vm2385_vm3, %v2330_v9, %v4653_v29 }
 0x34c   : > { %2439 = vst.msk [vmem:[%s4470_s13 + $0xa0] sm:$0xff] %vm2418_vm4, %v2406_v35  ;;  %v2336_v32 = vpop.permute.xlu1 %2335 }
 0x34d   : > { %v2409_v41 = vsel %vm2385_vm3, %v2336_v32, %v4337_v43 }
 0x34e   : > { %2442 = vst.msk [vmem:[%s4470_s13 + $0xb8] sm:$0xff] %vm2418_vm4, %v2409_v41  ;;  %v2334_v36 = vpop.permute.xlu0 %2333 }
 0x34f   : > { %v2408_v14 = vsel %vm2385_vm3, %v2334_v36, %v4654_v19 }
 0x350   : > { %2441 = vst.msk [vmem:[%s4470_s13 + $0xb0] sm:$0xff] %vm2418_vm4, %v2408_v14  ;;  %v2340_v49 = vpop.permute.xlu1 %2339 }
 0x351   : > { %v2411_v56 = vsel %vm2385_vm3, %v2340_v49, %v4655_v40 }
 0x352   : > { %2444 = vst.msk [vmem:[%s4470_s13 + $0xc8] sm:$0xff] %vm2418_vm4, %v2411_v56  ;;  %v2338_v42 = vpop.permute.xlu0 %2337 }
 0x353   : > { %v2410_v43 = vsel %vm2385_vm3, %v2338_v42, %v4656_v21 }
 0x354   : > { %2443 = vst.msk [vmem:[%s4470_s13 + $0xc0] sm:$0xff] %vm2418_vm4, %v2410_v43  ;;  %v2344_v30 = vpop.permute.xlu1 %2343 }
 0x355   : > { %v2413_v61 = vsel %vm2385_vm3, %v2344_v30, %v4657_v39 }
 0x356   : > { %2446 = vst.msk [vmem:[%s4470_s13 + $0xd8] sm:$0xff] %vm2418_vm4, %v2413_v61  ;;  %v2342_v23 = vpop.permute.xlu0 %2341 }
 0x357   : > { %v2412_v45 = vsel %vm2385_vm3, %v2342_v23, %v4658_v37 }
 0x358   : > { %2445 = vst.msk [vmem:[%s4470_s13 + $0xd0] sm:$0xff] %vm2418_vm4, %v2412_v45  ;;  %v2348_v51 = vpop.permute.xlu1 %2347 }
 0x359   : > { %v2415_v60 = vsel %vm2385_vm3, %v2348_v51, %v4373_v44 }
 0x35a   : > { %2448 = vst.msk [vmem:[%s4470_s13 + $0xe8] sm:$0xff] %vm2418_vm4, %v2415_v60  ;;  %v2346_v58 = vpop.permute.xlu0 %2345 }
 0x35b   : > { %v2414_v54 = vsel %vm2385_vm3, %v2346_v58, %v4379_v38 }
 0x35c   : > { %2447 = vst.msk [vmem:[%s4470_s13 + $0xe0] sm:$0xff] %vm2418_vm4, %v2414_v54  ;;  %v2352_v25 = vpop.permute.xlu1 %2351 }
 0x35d   : > { %v2417_v0 = vsel %vm2385_vm3, %v2352_v25, %v4385_v13 }
 0x35e   : > { %2450 = vst.msk [vmem:[%s4470_s13 + $0xf8] sm:$0xff] %vm2418_vm4, %v2417_v0  ;;  %v2350_v34 = vpop.permute.xlu0 %2349 }
 0x35f   : > { %v2416_v18 = vsel %vm2385_vm3, %v2350_v34, %v4389_v24 }
 0x360   : > { %2449 = vst.msk [vmem:[%s4470_s13 + $0xf0] sm:$0xff] %vm2418_vm4, %v2416_v18 }
 0x361 PF: > { %s15_s15 = sadd.s32 1, %s3294_s15  }
 0x362   : > { %p12_p1 = scmp.ge.s32.totalorder %s15_s15, 4  }
 0x364   :  { %14 = sbr.rel (!%p12_p1) target bundleno = 1 (0x1), region = 78 }
 0x369   :  { %2472 = vsyncpa [#allocation3], 1 }
 0x36a   :  { %2474 = vsyncpa [#allocation3 + $0x1], 1 }

</bundles_post_ra>
